<compile_context>
chip_gen: v6e
topology: v6e:2x2x1
jax: 0.10.0
libtpu: 0.0.40
codegen_flags: <defaults>
</compile_context>

<pallas_src>
import functools

import jax
import jax.numpy as jnp
import numpy as np
from jax.experimental import pallas as pl
from jax.experimental.pallas import tpu as pltpu

EPS = 1e-5  # PyTorch BatchNorm2d default eps

# ConvTranspose2d(k=4, s=2, p=1): output row 2m+r reads input row m+dh with
# kernel row kh for (dh, kh) in DECONV_TAPS[r]; identically for columns.
DECONV_TAPS = (((0, 1), (-1, 3)),    # r = 0
               ((1, 0), (0, 2)))     # r = 1


def upsample_bn_kernel(xu_ref, xs_ref, mask_ref,
                       w1_ref, b1_ref, g1_ref, be1_ref,
                       w3p_ref, b3_ref, g2_ref, be2_ref,
                       wdp_ref, bd_ref, o_ref,
                       *, n_img, height, width):
    m_pix = n_img * height * width
    inv_m = jnp.float32(1.0 / m_pix)

    def lane_shift(z, d):
        # result[:, q] = z[:, (q + d) mod M]; wrapped lanes are masked by caller.
        if d == 0:
            return z
        d = d % m_pix
        return jnp.concatenate([z[:, d:], z[:, :d]], axis=1)

    def tap(z, dh, dw):
        # Shifted copy of z with the image border (and the circular wrap,
        # which only happens at the border) zeroed via a constant 0/1 mask.
        t = lane_shift(z, dh * width + dw)
        if dh == 0 and dw == 0:
            return t
        return t * mask_ref[(dh + 1) * 3 + (dw + 1)]            # (1, M) f32

    def bn_relu(y, gamma, beta):
        # Training-mode batch statistics (biased variance), single pass on a
        # value: mean -> centered variance -> fused scale/shift -> ReLU.
        mean = jnp.sum(y, axis=1, keepdims=True) * inv_m        # (C, 1)
        cent = y - mean
        var = jnp.sum(cent * cent, axis=1, keepdims=True) * inv_m
        scale = gamma * jax.lax.rsqrt(var + EPS)
        return jnp.maximum(cent * scale + beta, 0.0)

    # ---- channel concat (sublane stack) + 1x1 conv + BN1 + ReLU ----------
    xu = jnp.concatenate([xu_ref[n] for n in range(n_img)], axis=1)   # (Cu, M)
    xs = jnp.concatenate([xs_ref[n] for n in range(n_img)], axis=1)   # (Cs, M)
    x = jnp.concatenate([xu, xs], axis=0)                             # (Cin, M)
    y1 = jnp.dot(w1_ref[...], x, preferred_element_type=jnp.float32) + b1_ref[...]
    z1 = bn_relu(y1, g1_ref[...], be1_ref[...])                       # (C, M)

    # ---- 3x3 conv (pad=1) as ONE im2col matmul + BN2 + ReLU --------------
    cols3 = jnp.concatenate(
        [tap(z1, kh - 1, kw - 1) for kh in range(3) for kw in range(3)],
        axis=0)                                                       # (9C, M)
    y2 = (jnp.dot(w3p_ref[...], cols3, preferred_element_type=jnp.float32)
          + b3_ref[...])
    z2 = bn_relu(y2, g2_ref[...], be2_ref[...])                       # (C, M)

    # ---- ConvTranspose2d(k=4, s=2, p=1): 4 phase im2col matmuls ----------
    taps2 = {(dh, dw): tap(z2, dh, dw)
             for dh in (-1, 0, 1) for dw in (-1, 0, 1)}
    for r in range(2):
        for s in range(2):
            cols = jnp.concatenate(
                [taps2[(dh, dw)]
                 for (dh, _) in DECONV_TAPS[r] for (dw, _) in DECONV_TAPS[s]],
                axis=0)                                               # (4C, M)
            o_ref[r, s, :, :] = (
                jnp.dot(wdp_ref[2 * r + s], cols,
                        preferred_element_type=jnp.float32) + bd_ref[...])


# ----------------------------------------------------------------------------
# Wrapper: trace-time constants + weight packing + phase interleave.
# ----------------------------------------------------------------------------
def _border_masks(n_img, height, width):
    m = n_img * height * width
    q = np.arange(m)
    h = (q // width) % height
    w = q % width
    masks = np.empty((9, 1, m), np.float32)
    for dh in (-1, 0, 1):
        for dw in (-1, 0, 1):
            ok = ((h + dh >= 0) & (h + dh < height)
                  & (w + dw >= 0) & (w + dw < width))
            masks[(dh + 1) * 3 + (dw + 1), 0, :] = ok
    return jnp.asarray(masks)


@jax.jit
def upsample_bn_forward(upsampled, shortcut, params):
    N, Cu, H, W = upsampled.shape
    C = params["w1"].shape[1]
    M = N * H * W

    xu = upsampled.astype(jnp.float32).reshape(N, Cu, H * W)
    xs = shortcut.astype(jnp.float32).reshape(N, Cu, H * W)
    masks = _border_masks(N, H, W)

    col = lambda v: v.astype(jnp.float32).reshape(C, 1)
    # LHS-packed weights (channel-major): out[co] = sum_k Wp[co, k] * cols[k].
    w1_cm = params["w1"].T                                            # (C, Cin)
    w3 = params["w3"]
    w3p = jnp.concatenate(
        [w3[kh, kw].T for kh in range(3) for kw in range(3)], axis=1)  # (C, 9C)
    wd = params["wd"]
    wdp = jnp.stack(
        [jnp.concatenate([wd[kh, kw].T
                          for (_, kh) in DECONV_TAPS[r]
                          for (_, kw) in DECONV_TAPS[s]], axis=1)
         for r in range(2) for s in range(2)], axis=0)                # (4, C, 4C)

    vmem = lambda: pl.BlockSpec(memory_space=pltpu.MemorySpace.VMEM)
    kernel = functools.partial(upsample_bn_kernel, n_img=N, height=H, width=W)

    out4 = pl.pallas_call(
        kernel,
        out_shape=jax.ShapeDtypeStruct((2, 2, C, M), jnp.float32),
        in_specs=[vmem() for _ in range(13)],
        out_specs=vmem(),
    )(xu, xs, masks, w1_cm, col(params["b1"]), col(params["gamma1"]),
      col(params["beta1"]), w3p, col(params["b3"]), col(params["gamma2"]),
      col(params["beta2"]), wdp, col(params["bd"]))

    # Phase interleave: (r,s,c,n,h,w) -> (n,c,h,r,w,s) -> (N, C, 2H, 2W).
    # TODO(synk): fold into the kernel at production shapes (2W >= 128).
    out = out4.reshape(2, 2, C, N, H, W).transpose(3, 2, 4, 0, 5, 1)
    return out.reshape(N, C, 2 * H, 2 * W)


# ----------------------------------------------------------------------------
# Pure-JAX reference (same param layout), high precision for a tight check.
# ----------------------------------------------------------------------------
def reference_forward(upsampled, shortcut, params):
    hi = jax.lax.Precision.HIGHEST
    x = jnp.concatenate([upsampled, shortcut], axis=1)
    x = jnp.transpose(x, (0, 2, 3, 1)).astype(jnp.float32)  # NHWC

    def bn_relu(y, gamma, beta):
        m = jnp.mean(y, axis=(0, 1, 2))
        v = jnp.mean((y - m) ** 2, axis=(0, 1, 2))
        return jnp.maximum(gamma * (y - m) / jnp.sqrt(v + EPS) + beta, 0.0)

    y1 = jnp.einsum("nhwi,io->nhwo", x, params["w1"], precision=hi) + params["b1"]
    z1 = bn_relu(y1, params["gamma1"], params["beta1"])
    y2 = jax.lax.conv_general_dilated(
        z1, params["w3"], (1, 1), ((1, 1), (1, 1)),
        dimension_numbers=("NHWC", "HWIO", "NHWC"), precision=hi,
    ) + params["b3"]
    z2 = bn_relu(y2, params["gamma2"], params["beta2"])
    # ConvTranspose(k=4,s=2,p=1) == dilated conv with spatially flipped kernel.
    out = jax.lax.conv_general_dilated(
        z2, params["wd"][::-1, ::-1], (1, 1), ((2, 2), (2, 2)),
        lhs_dilation=(2, 2),
        dimension_numbers=("NHWC", "HWIO", "NHWC"), precision=hi,
    ) + params["bd"]
    return jnp.transpose(out, (0, 3, 1, 2))


# ----------------------------------------------------------------------------
# Deterministic synthetic parameters (shapes per the module's __init__).
# ----------------------------------------------------------------------------
def init_params(key, in_channels, out_channels):
    ks = jax.random.split(key, 6)
    f32 = jnp.float32
    return {
        # Conv2d(in, out, 1): torch weight (out,in,1,1) -> stored as (in, out)
        "w1": 0.1 * jax.random.normal(ks[0], (in_channels, out_channels), f32),
        "b1": 0.1 * jax.random.normal(ks[1], (out_channels,), f32),
        "gamma1": jnp.ones((out_channels,), f32),
        "beta1": jnp.zeros((out_channels,), f32),
        # Conv2d(out, out, 3, pad=1): stored as (3,3,ci,co) [HWIO]
        "w3": 0.1 * jax.random.normal(ks[2], (3, 3, out_channels, out_channels), f32),
        "b3": 0.1 * jax.random.normal(ks[3], (out_channels,), f32),
        "gamma2": jnp.ones((out_channels,), f32),
        "beta2": jnp.zeros((out_channels,), f32),
        # ConvTranspose2d(out, out, 4, s=2, p=1): torch weight (ci,co,kh,kw)
        # stored as (kh,kw,ci,co)
        "wd": 0.1 * jax.random.normal(ks[4], (4, 4, out_channels, out_channels), f32),
        "bd": 0.1 * jax.random.normal(ks[5], (out_channels,), f32),
    }


if __name__ == "__main__":
    key = jax.random.PRNGKey(0)
    k_up, k_sc, k_par = jax.random.split(key, 3)

    N, C_half, H, W = 2, 4, 16, 16          # in_channels = 8, out_channels = 8
    in_channels, out_channels = 2 * C_half, 8

    upsampled = jax.random.normal(k_up, (N, C_half, H, W), jnp.float32)
    shortcut = jax.random.normal(k_sc, (N, C_half, H, W), jnp.float32)
    params = init_params(k_par, in_channels, out_channels)

    out = jax.block_until_ready(upsample_bn_forward(upsampled, shortcut, params))
    assert out.shape == (N, out_channels, 2 * H, 2 * W), out.shape

    ref = jax.block_until_ready(reference_forward(upsampled, shortcut, params))
    # Tightened from 3e-2: structural mistakes (wrong deconv tap / BN fold)
    # show up at O(0.1); the remaining margin only covers MXU f32
    # pass-emulation differences vs the HIGHEST-precision XLA reference.
    assert jnp.allclose(out, ref, rtol=1e-3, atol=1e-3), float(
        jnp.max(jnp.abs(out - ref)))

    print("KERNEL_OK")
</pallas_src>

<mosaic_0001>
module attributes {stable_mosaic.version = 11 : i64} {
  func.func @upsample_bn_kernel(%arg0: memref<2x4x256xf32, #tpu.memory_space<vmem>>, %arg1: memref<2x4x256xf32, #tpu.memory_space<vmem>>, %arg2: memref<9x1x512xf32, #tpu.memory_space<vmem>>, %arg3: memref<8x8xf32, #tpu.memory_space<vmem>>, %arg4: memref<8x1xf32, #tpu.memory_space<vmem>>, %arg5: memref<8x1xf32, #tpu.memory_space<vmem>>, %arg6: memref<8x1xf32, #tpu.memory_space<vmem>>, %arg7: memref<8x72xf32, #tpu.memory_space<vmem>>, %arg8: memref<8x1xf32, #tpu.memory_space<vmem>>, %arg9: memref<8x1xf32, #tpu.memory_space<vmem>>, %arg10: memref<8x1xf32, #tpu.memory_space<vmem>>, %arg11: memref<4x8x32xf32, #tpu.memory_space<vmem>>, %arg12: memref<8x1xf32, #tpu.memory_space<vmem>>, %arg13: memref<2x2x8x512xf32, #tpu.memory_space<vmem>>) attributes {dimension_semantics = [], scalar_prefetch = 0 : i64, scratch_operands = 0 : i64, tpu.core_type = #tpu.core_type<tc>} {
    %c0 = arith.constant 0 : index
    %c0_0 = arith.constant 0 : index
    %c0_1 = arith.constant 0 : index
    %0 = vector.load %arg0[%c0, %c0_0, %c0_1] : memref<2x4x256xf32, #tpu.memory_space<vmem>>, vector<1x4x256xf32>
    %1 = vector.shape_cast %0 : vector<1x4x256xf32> to vector<4x256xf32>
    %c1 = arith.constant 1 : index
    %c0_2 = arith.constant 0 : index
    %c0_3 = arith.constant 0 : index
    %2 = vector.load %arg0[%c1, %c0_2, %c0_3] : memref<2x4x256xf32, #tpu.memory_space<vmem>>, vector<1x4x256xf32>
    %3 = vector.shape_cast %2 : vector<1x4x256xf32> to vector<4x256xf32>
    %4 = tpu.concatenate %1, %3 in 1 : vector<4x256xf32>, vector<4x256xf32> -> vector<4x512xf32>
    %c0_4 = arith.constant 0 : index
    %c0_5 = arith.constant 0 : index
    %c0_6 = arith.constant 0 : index
    %5 = vector.load %arg1[%c0_4, %c0_5, %c0_6] : memref<2x4x256xf32, #tpu.memory_space<vmem>>, vector<1x4x256xf32>
    %6 = vector.shape_cast %5 : vector<1x4x256xf32> to vector<4x256xf32>
    %c1_7 = arith.constant 1 : index
    %c0_8 = arith.constant 0 : index
    %c0_9 = arith.constant 0 : index
    %7 = vector.load %arg1[%c1_7, %c0_8, %c0_9] : memref<2x4x256xf32, #tpu.memory_space<vmem>>, vector<1x4x256xf32>
    %8 = vector.shape_cast %7 : vector<1x4x256xf32> to vector<4x256xf32>
    %9 = tpu.concatenate %6, %8 in 1 : vector<4x256xf32>, vector<4x256xf32> -> vector<4x512xf32>
    %10 = tpu.concatenate %4, %9 in 0 : vector<4x512xf32>, vector<4x512xf32> -> vector<8x512xf32>
    %c0_10 = arith.constant 0 : index
    %c0_11 = arith.constant 0 : index
    %11 = vector.load %arg3[%c0_10, %c0_11] : memref<8x8xf32, #tpu.memory_space<vmem>>, vector<8x8xf32>
    %cst = arith.constant dense<0.000000e+00> : vector<8x512xf32>
    %12 = tpu.matmul %11, %10, %cst {dimension_numbers = #tpu.dot_dimension_numbers<[1], [0], [0], [1], [0, 0, 1, 1], [], []>} : vector<8x8xf32>, vector<8x512xf32>, vector<8x512xf32> -> vector<8x512xf32>
    %c0_12 = arith.constant 0 : index
    %c0_13 = arith.constant 0 : index
    %13 = vector.load %arg4[%c0_12, %c0_13] : memref<8x1xf32, #tpu.memory_space<vmem>>, vector<8x1xf32>
    %14 = vector.broadcast %13 : vector<8x1xf32> to vector<8x512xf32>
    %15 = arith.addf %12, %14 : vector<8x512xf32>
    %c0_14 = arith.constant 0 : index
    %c0_15 = arith.constant 0 : index
    %16 = vector.load %arg5[%c0_14, %c0_15] : memref<8x1xf32, #tpu.memory_space<vmem>>, vector<8x1xf32>
    %c0_16 = arith.constant 0 : index
    %c0_17 = arith.constant 0 : index
    %17 = vector.load %arg6[%c0_16, %c0_17] : memref<8x1xf32, #tpu.memory_space<vmem>>, vector<8x1xf32>
    %cst_18 = arith.constant dense<0.000000e+00> : vector<8xf32>
    %18 = vector.multi_reduction <add>, %15, %cst_18 [1] : vector<8x512xf32> to vector<8xf32>
    %19 = vector.shape_cast %18 : vector<8xf32> to vector<8x1xf32>
    %cst_19 = arith.constant 0.001953125 : f32
    %20 = vector.broadcast %cst_19 : f32 to vector<8x1xf32>
    %21 = arith.mulf %19, %20 : vector<8x1xf32>
    %22 = vector.broadcast %21 : vector<8x1xf32> to vector<8x512xf32>
    %23 = arith.subf %15, %22 : vector<8x512xf32>
    %24 = arith.mulf %23, %23 : vector<8x512xf32>
    %cst_20 = arith.constant dense<0.000000e+00> : vector<8xf32>
    %25 = vector.multi_reduction <add>, %24, %cst_20 [1] : vector<8x512xf32> to vector<8xf32>
    %26 = vector.shape_cast %25 : vector<8xf32> to vector<8x1xf32>
    %cst_21 = arith.constant 0.001953125 : f32
    %27 = vector.broadcast %cst_21 : f32 to vector<8x1xf32>
    %28 = arith.mulf %26, %27 : vector<8x1xf32>
    %cst_22 = arith.constant 9.99999974E-6 : f32
    %29 = vector.broadcast %cst_22 : f32 to vector<8x1xf32>
    %30 = arith.addf %28, %29 : vector<8x1xf32>
    %31 = math.rsqrt %30 : vector<8x1xf32>
    %32 = arith.mulf %16, %31 : vector<8x1xf32>
    %33 = vector.broadcast %32 : vector<8x1xf32> to vector<8x512xf32>
    %34 = arith.mulf %23, %33 : vector<8x512xf32>
    %35 = vector.broadcast %17 : vector<8x1xf32> to vector<8x512xf32>
    %36 = arith.addf %34, %35 : vector<8x512xf32>
    %cst_23 = arith.constant 0.000000e+00 : f32
    %37 = vector.broadcast %cst_23 : f32 to vector<8x512xf32>
    %38 = arith.maximumf %36, %37 : vector<8x512xf32>
    %39 = vector.extract_strided_slice %38 {offsets = [0, 495], sizes = [8, 17], strides = [1, 1]} : vector<8x512xf32> to vector<8x17xf32>
    %40 = vector.extract_strided_slice %38 {offsets = [0, 0], sizes = [8, 495], strides = [1, 1]} : vector<8x512xf32> to vector<8x495xf32>
    %41 = tpu.concatenate %39, %40 in 1 : vector<8x17xf32>, vector<8x495xf32> -> vector<8x512xf32>
    %c0_24 = arith.constant 0 : index
    %c0_25 = arith.constant 0 : index
    %c0_26 = arith.constant 0 : index
    %42 = vector.load %arg2[%c0_24, %c0_25, %c0_26] : memref<9x1x512xf32, #tpu.memory_space<vmem>>, vector<1x1x512xf32>
    %43 = vector.shape_cast %42 : vector<1x1x512xf32> to vector<1x512xf32>
    %44 = vector.broadcast %43 : vector<1x512xf32> to vector<8x512xf32>
    %45 = arith.mulf %41, %44 : vector<8x512xf32>
    %46 = vector.extract_strided_slice %38 {offsets = [0, 496], sizes = [8, 16], strides = [1, 1]} : vector<8x512xf32> to vector<8x16xf32>
    %47 = vector.extract_strided_slice %38 {offsets = [0, 0], sizes = [8, 496], strides = [1, 1]} : vector<8x512xf32> to vector<8x496xf32>
    %48 = tpu.concatenate %46, %47 in 1 : vector<8x16xf32>, vector<8x496xf32> -> vector<8x512xf32>
    %c1_27 = arith.constant 1 : index
    %c0_28 = arith.constant 0 : index
    %c0_29 = arith.constant 0 : index
    %49 = vector.load %arg2[%c1_27, %c0_28, %c0_29] : memref<9x1x512xf32, #tpu.memory_space<vmem>>, vector<1x1x512xf32>
    %50 = vector.shape_cast %49 : vector<1x1x512xf32> to vector<1x512xf32>
    %51 = vector.broadcast %50 : vector<1x512xf32> to vector<8x512xf32>
    %52 = arith.mulf %48, %51 : vector<8x512xf32>
    %53 = vector.extract_strided_slice %38 {offsets = [0, 497], sizes = [8, 15], strides = [1, 1]} : vector<8x512xf32> to vector<8x15xf32>
    %54 = vector.extract_strided_slice %38 {offsets = [0, 0], sizes = [8, 497], strides = [1, 1]} : vector<8x512xf32> to vector<8x497xf32>
    %55 = tpu.concatenate %53, %54 in 1 : vector<8x15xf32>, vector<8x497xf32> -> vector<8x512xf32>
    %c2 = arith.constant 2 : index
    %c0_30 = arith.constant 0 : index
    %c0_31 = arith.constant 0 : index
    %56 = vector.load %arg2[%c2, %c0_30, %c0_31] : memref<9x1x512xf32, #tpu.memory_space<vmem>>, vector<1x1x512xf32>
    %57 = vector.shape_cast %56 : vector<1x1x512xf32> to vector<1x512xf32>
    %58 = vector.broadcast %57 : vector<1x512xf32> to vector<8x512xf32>
    %59 = arith.mulf %55, %58 : vector<8x512xf32>
    %60 = vector.extract_strided_slice %38 {offsets = [0, 511], sizes = [8, 1], strides = [1, 1]} : vector<8x512xf32> to vector<8x1xf32>
    %61 = vector.extract_strided_slice %38 {offsets = [0, 0], sizes = [8, 511], strides = [1, 1]} : vector<8x512xf32> to vector<8x511xf32>
    %62 = tpu.concatenate %60, %61 in 1 : vector<8x1xf32>, vector<8x511xf32> -> vector<8x512xf32>
    %c3 = arith.constant 3 : index
    %c0_32 = arith.constant 0 : index
    %c0_33 = arith.constant 0 : index
    %63 = vector.load %arg2[%c3, %c0_32, %c0_33] : memref<9x1x512xf32, #tpu.memory_space<vmem>>, vector<1x1x512xf32>
    %64 = vector.shape_cast %63 : vector<1x1x512xf32> to vector<1x512xf32>
    %65 = vector.broadcast %64 : vector<1x512xf32> to vector<8x512xf32>
    %66 = arith.mulf %62, %65 : vector<8x512xf32>
    %67 = vector.extract_strided_slice %38 {offsets = [0, 1], sizes = [8, 511], strides = [1, 1]} : vector<8x512xf32> to vector<8x511xf32>
    %68 = vector.extract_strided_slice %38 {offsets = [0, 0], sizes = [8, 1], strides = [1, 1]} : vector<8x512xf32> to vector<8x1xf32>
    %69 = tpu.concatenate %67, %68 in 1 : vector<8x511xf32>, vector<8x1xf32> -> vector<8x512xf32>
    %c5 = arith.constant 5 : index
    %c0_34 = arith.constant 0 : index
    %c0_35 = arith.constant 0 : index
    %70 = vector.load %arg2[%c5, %c0_34, %c0_35] : memref<9x1x512xf32, #tpu.memory_space<vmem>>, vector<1x1x512xf32>
    %71 = vector.shape_cast %70 : vector<1x1x512xf32> to vector<1x512xf32>
    %72 = vector.broadcast %71 : vector<1x512xf32> to vector<8x512xf32>
    %73 = arith.mulf %69, %72 : vector<8x512xf32>
    %74 = vector.extract_strided_slice %38 {offsets = [0, 15], sizes = [8, 497], strides = [1, 1]} : vector<8x512xf32> to vector<8x497xf32>
    %75 = vector.extract_strided_slice %38 {offsets = [0, 0], sizes = [8, 15], strides = [1, 1]} : vector<8x512xf32> to vector<8x15xf32>
    %76 = tpu.concatenate %74, %75 in 1 : vector<8x497xf32>, vector<8x15xf32> -> vector<8x512xf32>
    %c6 = arith.constant 6 : index
    %c0_36 = arith.constant 0 : index
    %c0_37 = arith.constant 0 : index
    %77 = vector.load %arg2[%c6, %c0_36, %c0_37] : memref<9x1x512xf32, #tpu.memory_space<vmem>>, vector<1x1x512xf32>
    %78 = vector.shape_cast %77 : vector<1x1x512xf32> to vector<1x512xf32>
    %79 = vector.broadcast %78 : vector<1x512xf32> to vector<8x512xf32>
    %80 = arith.mulf %76, %79 : vector<8x512xf32>
    %81 = vector.extract_strided_slice %38 {offsets = [0, 16], sizes = [8, 496], strides = [1, 1]} : vector<8x512xf32> to vector<8x496xf32>
    %82 = vector.extract_strided_slice %38 {offsets = [0, 0], sizes = [8, 16], strides = [1, 1]} : vector<8x512xf32> to vector<8x16xf32>
    %83 = tpu.concatenate %81, %82 in 1 : vector<8x496xf32>, vector<8x16xf32> -> vector<8x512xf32>
    %c7 = arith.constant 7 : index
    %c0_38 = arith.constant 0 : index
    %c0_39 = arith.constant 0 : index
    %84 = vector.load %arg2[%c7, %c0_38, %c0_39] : memref<9x1x512xf32, #tpu.memory_space<vmem>>, vector<1x1x512xf32>
    %85 = vector.shape_cast %84 : vector<1x1x512xf32> to vector<1x512xf32>
    %86 = vector.broadcast %85 : vector<1x512xf32> to vector<8x512xf32>
    %87 = arith.mulf %83, %86 : vector<8x512xf32>
    %88 = vector.extract_strided_slice %38 {offsets = [0, 17], sizes = [8, 495], strides = [1, 1]} : vector<8x512xf32> to vector<8x495xf32>
    %89 = vector.extract_strided_slice %38 {offsets = [0, 0], sizes = [8, 17], strides = [1, 1]} : vector<8x512xf32> to vector<8x17xf32>
    %90 = tpu.concatenate %88, %89 in 1 : vector<8x495xf32>, vector<8x17xf32> -> vector<8x512xf32>
    %c8 = arith.constant 8 : index
    %c0_40 = arith.constant 0 : index
    %c0_41 = arith.constant 0 : index
    %91 = vector.load %arg2[%c8, %c0_40, %c0_41] : memref<9x1x512xf32, #tpu.memory_space<vmem>>, vector<1x1x512xf32>
    %92 = vector.shape_cast %91 : vector<1x1x512xf32> to vector<1x512xf32>
    %93 = vector.broadcast %92 : vector<1x512xf32> to vector<8x512xf32>
    %94 = arith.mulf %90, %93 : vector<8x512xf32>
    %95 = tpu.concatenate %45, %52, %59, %66, %38, %73, %80, %87, %94 in 0 : vector<8x512xf32>, vector<8x512xf32>, vector<8x512xf32>, vector<8x512xf32>, vector<8x512xf32>, vector<8x512xf32>, vector<8x512xf32>, vector<8x512xf32>, vector<8x512xf32> -> vector<72x512xf32>
    %c0_42 = arith.constant 0 : index
    %c0_43 = arith.constant 0 : index
    %96 = vector.load %arg7[%c0_42, %c0_43] : memref<8x72xf32, #tpu.memory_space<vmem>>, vector<8x72xf32>
    %cst_44 = arith.constant dense<0.000000e+00> : vector<8x512xf32>
    %97 = tpu.matmul %96, %95, %cst_44 {dimension_numbers = #tpu.dot_dimension_numbers<[1], [0], [0], [1], [0, 0, 1, 1], [], []>} : vector<8x72xf32>, vector<72x512xf32>, vector<8x512xf32> -> vector<8x512xf32>
    %c0_45 = arith.constant 0 : index
    %c0_46 = arith.constant 0 : index
    %98 = vector.load %arg8[%c0_45, %c0_46] : memref<8x1xf32, #tpu.memory_space<vmem>>, vector<8x1xf32>
    %99 = vector.broadcast %98 : vector<8x1xf32> to vector<8x512xf32>
    %100 = arith.addf %97, %99 : vector<8x512xf32>
    %c0_47 = arith.constant 0 : index
    %c0_48 = arith.constant 0 : index
    %101 = vector.load %arg9[%c0_47, %c0_48] : memref<8x1xf32, #tpu.memory_space<vmem>>, vector<8x1xf32>
    %c0_49 = arith.constant 0 : index
    %c0_50 = arith.constant 0 : index
    %102 = vector.load %arg10[%c0_49, %c0_50] : memref<8x1xf32, #tpu.memory_space<vmem>>, vector<8x1xf32>
    %cst_51 = arith.constant dense<0.000000e+00> : vector<8xf32>
    %103 = vector.multi_reduction <add>, %100, %cst_51 [1] : vector<8x512xf32> to vector<8xf32>
    %104 = vector.shape_cast %103 : vector<8xf32> to vector<8x1xf32>
    %cst_52 = arith.constant 0.001953125 : f32
    %105 = vector.broadcast %cst_52 : f32 to vector<8x1xf32>
    %106 = arith.mulf %104, %105 : vector<8x1xf32>
    %107 = vector.broadcast %106 : vector<8x1xf32> to vector<8x512xf32>
    %108 = arith.subf %100, %107 : vector<8x512xf32>
    %109 = arith.mulf %108, %108 : vector<8x512xf32>
    %cst_53 = arith.constant dense<0.000000e+00> : vector<8xf32>
    %110 = vector.multi_reduction <add>, %109, %cst_53 [1] : vector<8x512xf32> to vector<8xf32>
    %111 = vector.shape_cast %110 : vector<8xf32> to vector<8x1xf32>
    %cst_54 = arith.constant 0.001953125 : f32
    %112 = vector.broadcast %cst_54 : f32 to vector<8x1xf32>
    %113 = arith.mulf %111, %112 : vector<8x1xf32>
    %cst_55 = arith.constant 9.99999974E-6 : f32
    %114 = vector.broadcast %cst_55 : f32 to vector<8x1xf32>
    %115 = arith.addf %113, %114 : vector<8x1xf32>
    %116 = math.rsqrt %115 : vector<8x1xf32>
    %117 = arith.mulf %101, %116 : vector<8x1xf32>
    %118 = vector.broadcast %117 : vector<8x1xf32> to vector<8x512xf32>
    %119 = arith.mulf %108, %118 : vector<8x512xf32>
    %120 = vector.broadcast %102 : vector<8x1xf32> to vector<8x512xf32>
    %121 = arith.addf %119, %120 : vector<8x512xf32>
    %cst_56 = arith.constant 0.000000e+00 : f32
    %122 = vector.broadcast %cst_56 : f32 to vector<8x512xf32>
    %123 = arith.maximumf %121, %122 : vector<8x512xf32>
    %124 = vector.extract_strided_slice %123 {offsets = [0, 495], sizes = [8, 17], strides = [1, 1]} : vector<8x512xf32> to vector<8x17xf32>
    %125 = vector.extract_strided_slice %123 {offsets = [0, 0], sizes = [8, 495], strides = [1, 1]} : vector<8x512xf32> to vector<8x495xf32>
    %126 = tpu.concatenate %124, %125 in 1 : vector<8x17xf32>, vector<8x495xf32> -> vector<8x512xf32>
    %c0_57 = arith.constant 0 : index
    %c0_58 = arith.constant 0 : index
    %c0_59 = arith.constant 0 : index
    %127 = vector.load %arg2[%c0_57, %c0_58, %c0_59] : memref<9x1x512xf32, #tpu.memory_space<vmem>>, vector<1x1x512xf32>
    %128 = vector.shape_cast %127 : vector<1x1x512xf32> to vector<1x512xf32>
    %129 = vector.broadcast %128 : vector<1x512xf32> to vector<8x512xf32>
    %130 = arith.mulf %126, %129 : vector<8x512xf32>
    %131 = vector.extract_strided_slice %123 {offsets = [0, 496], sizes = [8, 16], strides = [1, 1]} : vector<8x512xf32> to vector<8x16xf32>
    %132 = vector.extract_strided_slice %123 {offsets = [0, 0], sizes = [8, 496], strides = [1, 1]} : vector<8x512xf32> to vector<8x496xf32>
    %133 = tpu.concatenate %131, %132 in 1 : vector<8x16xf32>, vector<8x496xf32> -> vector<8x512xf32>
    %c1_60 = arith.constant 1 : index
    %c0_61 = arith.constant 0 : index
    %c0_62 = arith.constant 0 : index
    %134 = vector.load %arg2[%c1_60, %c0_61, %c0_62] : memref<9x1x512xf32, #tpu.memory_space<vmem>>, vector<1x1x512xf32>
    %135 = vector.shape_cast %134 : vector<1x1x512xf32> to vector<1x512xf32>
    %136 = vector.broadcast %135 : vector<1x512xf32> to vector<8x512xf32>
    %137 = arith.mulf %133, %136 : vector<8x512xf32>
    %138 = vector.extract_strided_slice %123 {offsets = [0, 497], sizes = [8, 15], strides = [1, 1]} : vector<8x512xf32> to vector<8x15xf32>
    %139 = vector.extract_strided_slice %123 {offsets = [0, 0], sizes = [8, 497], strides = [1, 1]} : vector<8x512xf32> to vector<8x497xf32>
    %140 = tpu.concatenate %138, %139 in 1 : vector<8x15xf32>, vector<8x497xf32> -> vector<8x512xf32>
    %c2_63 = arith.constant 2 : index
    %c0_64 = arith.constant 0 : index
    %c0_65 = arith.constant 0 : index
    %141 = vector.load %arg2[%c2_63, %c0_64, %c0_65] : memref<9x1x512xf32, #tpu.memory_space<vmem>>, vector<1x1x512xf32>
    %142 = vector.shape_cast %141 : vector<1x1x512xf32> to vector<1x512xf32>
    %143 = vector.broadcast %142 : vector<1x512xf32> to vector<8x512xf32>
    %144 = arith.mulf %140, %143 : vector<8x512xf32>
    %145 = vector.extract_strided_slice %123 {offsets = [0, 511], sizes = [8, 1], strides = [1, 1]} : vector<8x512xf32> to vector<8x1xf32>
    %146 = vector.extract_strided_slice %123 {offsets = [0, 0], sizes = [8, 511], strides = [1, 1]} : vector<8x512xf32> to vector<8x511xf32>
    %147 = tpu.concatenate %145, %146 in 1 : vector<8x1xf32>, vector<8x511xf32> -> vector<8x512xf32>
    %c3_66 = arith.constant 3 : index
    %c0_67 = arith.constant 0 : index
    %c0_68 = arith.constant 0 : index
    %148 = vector.load %arg2[%c3_66, %c0_67, %c0_68] : memref<9x1x512xf32, #tpu.memory_space<vmem>>, vector<1x1x512xf32>
    %149 = vector.shape_cast %148 : vector<1x1x512xf32> to vector<1x512xf32>
    %150 = vector.broadcast %149 : vector<1x512xf32> to vector<8x512xf32>
    %151 = arith.mulf %147, %150 : vector<8x512xf32>
    %152 = vector.extract_strided_slice %123 {offsets = [0, 1], sizes = [8, 511], strides = [1, 1]} : vector<8x512xf32> to vector<8x511xf32>
    %153 = vector.extract_strided_slice %123 {offsets = [0, 0], sizes = [8, 1], strides = [1, 1]} : vector<8x512xf32> to vector<8x1xf32>
    %154 = tpu.concatenate %152, %153 in 1 : vector<8x511xf32>, vector<8x1xf32> -> vector<8x512xf32>
    %c5_69 = arith.constant 5 : index
    %c0_70 = arith.constant 0 : index
    %c0_71 = arith.constant 0 : index
    %155 = vector.load %arg2[%c5_69, %c0_70, %c0_71] : memref<9x1x512xf32, #tpu.memory_space<vmem>>, vector<1x1x512xf32>
    %156 = vector.shape_cast %155 : vector<1x1x512xf32> to vector<1x512xf32>
    %157 = vector.broadcast %156 : vector<1x512xf32> to vector<8x512xf32>
    %158 = arith.mulf %154, %157 : vector<8x512xf32>
    %159 = vector.extract_strided_slice %123 {offsets = [0, 15], sizes = [8, 497], strides = [1, 1]} : vector<8x512xf32> to vector<8x497xf32>
    %160 = vector.extract_strided_slice %123 {offsets = [0, 0], sizes = [8, 15], strides = [1, 1]} : vector<8x512xf32> to vector<8x15xf32>
    %161 = tpu.concatenate %159, %160 in 1 : vector<8x497xf32>, vector<8x15xf32> -> vector<8x512xf32>
    %c6_72 = arith.constant 6 : index
    %c0_73 = arith.constant 0 : index
    %c0_74 = arith.constant 0 : index
    %162 = vector.load %arg2[%c6_72, %c0_73, %c0_74] : memref<9x1x512xf32, #tpu.memory_space<vmem>>, vector<1x1x512xf32>
    %163 = vector.shape_cast %162 : vector<1x1x512xf32> to vector<1x512xf32>
    %164 = vector.broadcast %163 : vector<1x512xf32> to vector<8x512xf32>
    %165 = arith.mulf %161, %164 : vector<8x512xf32>
    %166 = vector.extract_strided_slice %123 {offsets = [0, 16], sizes = [8, 496], strides = [1, 1]} : vector<8x512xf32> to vector<8x496xf32>
    %167 = vector.extract_strided_slice %123 {offsets = [0, 0], sizes = [8, 16], strides = [1, 1]} : vector<8x512xf32> to vector<8x16xf32>
    %168 = tpu.concatenate %166, %167 in 1 : vector<8x496xf32>, vector<8x16xf32> -> vector<8x512xf32>
    %c7_75 = arith.constant 7 : index
    %c0_76 = arith.constant 0 : index
    %c0_77 = arith.constant 0 : index
    %169 = vector.load %arg2[%c7_75, %c0_76, %c0_77] : memref<9x1x512xf32, #tpu.memory_space<vmem>>, vector<1x1x512xf32>
    %170 = vector.shape_cast %169 : vector<1x1x512xf32> to vector<1x512xf32>
    %171 = vector.broadcast %170 : vector<1x512xf32> to vector<8x512xf32>
    %172 = arith.mulf %168, %171 : vector<8x512xf32>
    %173 = vector.extract_strided_slice %123 {offsets = [0, 17], sizes = [8, 495], strides = [1, 1]} : vector<8x512xf32> to vector<8x495xf32>
    %174 = vector.extract_strided_slice %123 {offsets = [0, 0], sizes = [8, 17], strides = [1, 1]} : vector<8x512xf32> to vector<8x17xf32>
    %175 = tpu.concatenate %173, %174 in 1 : vector<8x495xf32>, vector<8x17xf32> -> vector<8x512xf32>
    %c8_78 = arith.constant 8 : index
    %c0_79 = arith.constant 0 : index
    %c0_80 = arith.constant 0 : index
    %176 = vector.load %arg2[%c8_78, %c0_79, %c0_80] : memref<9x1x512xf32, #tpu.memory_space<vmem>>, vector<1x1x512xf32>
    %177 = vector.shape_cast %176 : vector<1x1x512xf32> to vector<1x512xf32>
    %178 = vector.broadcast %177 : vector<1x512xf32> to vector<8x512xf32>
    %179 = arith.mulf %175, %178 : vector<8x512xf32>
    %180 = tpu.concatenate %123, %151, %137, %130 in 0 : vector<8x512xf32>, vector<8x512xf32>, vector<8x512xf32>, vector<8x512xf32> -> vector<32x512xf32>
    %c0_81 = arith.constant 0 : index
    %c0_82 = arith.constant 0 : index
    %c0_83 = arith.constant 0 : index
    %181 = vector.load %arg11[%c0_81, %c0_82, %c0_83] : memref<4x8x32xf32, #tpu.memory_space<vmem>>, vector<1x8x32xf32>
    %182 = vector.shape_cast %181 : vector<1x8x32xf32> to vector<8x32xf32>
    %cst_84 = arith.constant dense<0.000000e+00> : vector<8x512xf32>
    %183 = tpu.matmul %182, %180, %cst_84 {dimension_numbers = #tpu.dot_dimension_numbers<[1], [0], [0], [1], [0, 0, 1, 1], [], []>} : vector<8x32xf32>, vector<32x512xf32>, vector<8x512xf32> -> vector<8x512xf32>
    %c0_85 = arith.constant 0 : index
    %c0_86 = arith.constant 0 : index
    %184 = vector.load %arg12[%c0_85, %c0_86] : memref<8x1xf32, #tpu.memory_space<vmem>>, vector<8x1xf32>
    %185 = vector.broadcast %184 : vector<8x1xf32> to vector<8x512xf32>
    %186 = arith.addf %183, %185 : vector<8x512xf32>
    %c0_87 = arith.constant 0 : index
    %c0_88 = arith.constant 0 : index
    %c0_89 = arith.constant 0 : index
    %c0_90 = arith.constant 0 : index
    %187 = vector.load %arg13[%c0_87, %c0_88, %c0_89, %c0_90] : memref<2x2x8x512xf32, #tpu.memory_space<vmem>>, vector<1x1x8x512xf32>
    %188 = vector.shape_cast %187 : vector<1x1x8x512xf32> to vector<8x512xf32>
    %189 = vector.shape_cast %186 : vector<8x512xf32> to vector<1x1x8x512xf32>
    tpu.vector_store %arg13[%c0_87, %c0_88, %c0_89, %c0_90], %189 {strides = array<i32>} : memref<2x2x8x512xf32, #tpu.memory_space<vmem>>, vector<1x1x8x512xf32>,
    %190 = tpu.concatenate %158, %123, %144, %137 in 0 : vector<8x512xf32>, vector<8x512xf32>, vector<8x512xf32>, vector<8x512xf32> -> vector<32x512xf32>
    %c1_91 = arith.constant 1 : index
    %c0_92 = arith.constant 0 : index
    %c0_93 = arith.constant 0 : index
    %191 = vector.load %arg11[%c1_91, %c0_92, %c0_93] : memref<4x8x32xf32, #tpu.memory_space<vmem>>, vector<1x8x32xf32>
    %192 = vector.shape_cast %191 : vector<1x8x32xf32> to vector<8x32xf32>
    %cst_94 = arith.constant dense<0.000000e+00> : vector<8x512xf32>
    %193 = tpu.matmul %192, %190, %cst_94 {dimension_numbers = #tpu.dot_dimension_numbers<[1], [0], [0], [1], [0, 0, 1, 1], [], []>} : vector<8x32xf32>, vector<32x512xf32>, vector<8x512xf32> -> vector<8x512xf32>
    %c0_95 = arith.constant 0 : index
    %c0_96 = arith.constant 0 : index
    %194 = vector.load %arg12[%c0_95, %c0_96] : memref<8x1xf32, #tpu.memory_space<vmem>>, vector<8x1xf32>
    %195 = vector.broadcast %194 : vector<8x1xf32> to vector<8x512xf32>
    %196 = arith.addf %193, %195 : vector<8x512xf32>
    %c0_97 = arith.constant 0 : index
    %c1_98 = arith.constant 1 : index
    %c0_99 = arith.constant 0 : index
    %c0_100 = arith.constant 0 : index
    %197 = vector.load %arg13[%c0_97, %c1_98, %c0_99, %c0_100] : memref<2x2x8x512xf32, #tpu.memory_space<vmem>>, vector<1x1x8x512xf32>
    %198 = vector.shape_cast %197 : vector<1x1x8x512xf32> to vector<8x512xf32>
    %199 = vector.shape_cast %196 : vector<8x512xf32> to vector<1x1x8x512xf32>
    tpu.vector_store %arg13[%c0_97, %c1_98, %c0_99, %c0_100], %199 {strides = array<i32>} : memref<2x2x8x512xf32, #tpu.memory_space<vmem>>, vector<1x1x8x512xf32>,
    %200 = tpu.concatenate %172, %165, %123, %151 in 0 : vector<8x512xf32>, vector<8x512xf32>, vector<8x512xf32>, vector<8x512xf32> -> vector<32x512xf32>
    %c2_101 = arith.constant 2 : index
    %c0_102 = arith.constant 0 : index
    %c0_103 = arith.constant 0 : index
    %201 = vector.load %arg11[%c2_101, %c0_102, %c0_103] : memref<4x8x32xf32, #tpu.memory_space<vmem>>, vector<1x8x32xf32>
    %202 = vector.shape_cast %201 : vector<1x8x32xf32> to vector<8x32xf32>
    %cst_104 = arith.constant dense<0.000000e+00> : vector<8x512xf32>
    %203 = tpu.matmul %202, %200, %cst_104 {dimension_numbers = #tpu.dot_dimension_numbers<[1], [0], [0], [1], [0, 0, 1, 1], [], []>} : vector<8x32xf32>, vector<32x512xf32>, vector<8x512xf32> -> vector<8x512xf32>
    %c0_105 = arith.constant 0 : index
    %c0_106 = arith.constant 0 : index
    %204 = vector.load %arg12[%c0_105, %c0_106] : memref<8x1xf32, #tpu.memory_space<vmem>>, vector<8x1xf32>
    %205 = vector.broadcast %204 : vector<8x1xf32> to vector<8x512xf32>
    %206 = arith.addf %203, %205 : vector<8x512xf32>
    %c1_107 = arith.constant 1 : index
    %c0_108 = arith.constant 0 : index
    %c0_109 = arith.constant 0 : index
    %c0_110 = arith.constant 0 : index
    %207 = vector.load %arg13[%c1_107, %c0_108, %c0_109, %c0_110] : memref<2x2x8x512xf32, #tpu.memory_space<vmem>>, vector<1x1x8x512xf32>
    %208 = vector.shape_cast %207 : vector<1x1x8x512xf32> to vector<8x512xf32>
    %209 = vector.shape_cast %206 : vector<8x512xf32> to vector<1x1x8x512xf32>
    tpu.vector_store %arg13[%c1_107, %c0_108, %c0_109, %c0_110], %209 {strides = array<i32>} : memref<2x2x8x512xf32, #tpu.memory_space<vmem>>, vector<1x1x8x512xf32>,
    %210 = tpu.concatenate %179, %172, %158, %123 in 0 : vector<8x512xf32>, vector<8x512xf32>, vector<8x512xf32>, vector<8x512xf32> -> vector<32x512xf32>
    %c3_111 = arith.constant 3 : index
    %c0_112 = arith.constant 0 : index
    %c0_113 = arith.constant 0 : index
    %211 = vector.load %arg11[%c3_111, %c0_112, %c0_113] : memref<4x8x32xf32, #tpu.memory_space<vmem>>, vector<1x8x32xf32>
    %212 = vector.shape_cast %211 : vector<1x8x32xf32> to vector<8x32xf32>
    %cst_114 = arith.constant dense<0.000000e+00> : vector<8x512xf32>
    %213 = tpu.matmul %212, %210, %cst_114 {dimension_numbers = #tpu.dot_dimension_numbers<[1], [0], [0], [1], [0, 0, 1, 1], [], []>} : vector<8x32xf32>, vector<32x512xf32>, vector<8x512xf32> -> vector<8x512xf32>
    %c0_115 = arith.constant 0 : index
    %c0_116 = arith.constant 0 : index
    %214 = vector.load %arg12[%c0_115, %c0_116] : memref<8x1xf32, #tpu.memory_space<vmem>>, vector<8x1xf32>
    %215 = vector.broadcast %214 : vector<8x1xf32> to vector<8x512xf32>
    %216 = arith.addf %213, %215 : vector<8x512xf32>
    %c1_117 = arith.constant 1 : index
    %c1_118 = arith.constant 1 : index
    %c0_119 = arith.constant 0 : index
    %c0_120 = arith.constant 0 : index
    %217 = vector.load %arg13[%c1_117, %c1_118, %c0_119, %c0_120] : memref<2x2x8x512xf32, #tpu.memory_space<vmem>>, vector<1x1x8x512xf32>
    %218 = vector.shape_cast %217 : vector<1x1x8x512xf32> to vector<8x512xf32>
    %219 = vector.shape_cast %216 : vector<8x512xf32> to vector<1x1x8x512xf32>
    tpu.vector_store %arg13[%c1_117, %c1_118, %c0_119, %c0_120], %219 {strides = array<i32>} : memref<2x2x8x512xf32, #tpu.memory_space<vmem>>, vector<1x1x8x512xf32>,
    return
  }
}

</mosaic_0001>

<bundles_post_ra>
// kernel: upsample_bn_forward.1
= control target key start
LH: loop header
LB: loop body
LE: loop exit
PB: predicated region body
PF: predicated region fallthrough
CT: control target
= control target key end

     0   :  { %vm68_vm0 = vcmask 1043456   ;;  %v1699_v3 = vmov 0.0   ;;  %v1700_v9 = vmov 0   ;;  %vm80_vm1 = vcmask 64512   ;;  %s1701_s20 = smov 112   ;;  %s1704_s21 = smov 127   ;;  %s2372_s0 = inlined_call_operand.vmem [shape: f32[2,4,256], index: 0, kind: input, shape index: {}]   ;;  %s2373_s1 = inlined_call_operand.vmem [shape: f32[2,4,256], index: 1, kind: input, shape index: {}]   ;;  %s2374_s4 = inlined_call_operand.vmem [shape: f32[8,1], index: 4, kind: input, shape index: {}]   ;;  %s2375_s3 = inlined_call_operand.vmem [shape: f32[8,8], index: 3, kind: input, shape index: {}]   ;;  %s2376_s5 = inlined_call_operand.vmem [shape: f32[8,1], index: 5, kind: input, shape index: {}]   ;;  %s2377_s6 = inlined_call_operand.vmem [shape: f32[8,1], index: 6, kind: input, shape index: {}]   ;;  %s2378_s8 = inlined_call_operand.vmem [shape: f32[8,1], index: 8, kind: input, shape index: {}]   ;;  %s2379_s2 = inlined_call_operand.vmem [shape: f32[9,1,512], index: 2, kind: input, shape index: {}]   ;;  %s2380_s7 = inlined_call_operand.vmem [shape: f32[8,72], index: 7, kind: input, shape index: {}]   ;;  %s2381_s10 = inlined_call_operand.vmem [shape: f32[8,1], index: 10, kind: input, shape index: {}]   ;;  %s2382_s9 = inlined_call_operand.vmem [shape: f32[8,1], index: 9, kind: input, shape index: {}]   ;;  %s2383_s12 = inlined_call_operand.vmem [shape: f32[8,1], index: 12, kind: input, shape index: {}]   ;;  %s2384_s11 = inlined_call_operand.vmem [shape: f32[4,8,32], index: 11, kind: input, shape index: {}]   ;;  %s2385_s13 = inlined_call_operand.vmem [shape: f32[2,2,8,512], index: 13, kind: output, shape index: {}]  }
   0x1   :  { %v44_v0 = vld [vmem:[%s2372_s0] sm:$0xff]  ;;  %v1643_v2 = vld [vmem:[%s2372_s0 + $0x8] sm:$0xff]  ;;  %148 = vmatprep.mubr.f32.mxu0 %v1699_v3  ;;  %219 = vmatprep.mubr.f32.mxu1 %v1699_v3  ;;  %s1705_s22 = smov 1   ;;  %s1706_s23 = smov 15   ;;  %vm599_vm2 = vcmask 908288   ;;  %vm554_vm3 = vcmask 916480  }
   0x2   :  { %v53_v1 = vld [vmem:[%s2373_s1] sm:$0xff]  ;;  %v48_v4 = vcombine.high %v44_v0, %v44_v0  ;;  %v51_v6 = vcombine.high %v1643_v2, %v1643_v2  ;;  %v1644_v7 = vld [vmem:[%s2373_s1 + $0x8] sm:$0xff]  ;;  %1689 = vset.pattern.permute.xlu0 %v1700_v9  ;;  %1690 = vset.pattern.permute.xlu1 %v1700_v9  ;;  %s1707_s24 = smov 16   ;;  %s1708_s25 = smov 17   ;;  %vm509_vm4 = vcmask 924672   ;;  %vm464_vm5 = vcmask 1039360  }
   0x3   :  { %v57_v5 = vcombine.high %v53_v1, %v53_v1  ;;  %v60_v8 = vrot.slane %v53_v1, 4  ;;  %v74_v10 = vld [vmem:[%s2374_s4] sm:$0xff]  ;;  %v59_v11 = vcombine.high %v1644_v7, %v1644_v7  ;;  %v62_v12 = vrot.slane %v1644_v7, 4 }
   0x4   :  { %77 = vperm.xlu0 %1689, %v74_v10   ;;  %v73_v15 = vld [vmem:[%s2375_s3] sm:$0xff]  ;;  %v297_v1 = vlaneseq  ;;  %vm420_vm6 = vcmask 7168   ;;  %vm375_vm7 = vcmask 121856   ;;  %vm330_vm8 = vcmask 130048  }
   0x5   :  { %v70_v13 = vsel %vm68_vm0, %v48_v4, %v57_v5  ;;  %v69_v14 = vsel %vm68_vm0, %v44_v0, %v60_v8  ;;  %v72_v16 = vsel %vm68_vm0, %v51_v6, %v59_v11  ;;  %v71_v17 = vsel %vm68_vm0, %v1643_v2, %v62_v12  ;;  %v226_v46 = vld [vmem:[%s2376_s5] sm:$0xff]  ;;  %s1702_s5 = smov 111  }
   0x6   :  { %114 = vmatprep.subr.mxu0 %v70_v13  ;;  %185 = vmatprep.subr.mxu1 %v72_v16  ;;  %v227_v49 = vld [vmem:[%s2377_s6] sm:$0xff]  ;;  %s1703_s6 = smov 113   ;;  %v298_v2 = vshrl.u32 %v297_v1, 7  ;;  %vm286_vm9 = vcmask 138240   ;;  %vm643_vm10 = vcmask 588800   ;;  %vm1015_vm11 = vcmask 261120  }
   0x7   :  { %115 = vmatpush1.msra.mxu0 %v69_v14  ;;  %186 = vmatpush1.msra.mxu1 %v71_v17  ;;  %v637_v0 = vld [vmem:[%s2378_s8] sm:$0xff] }
   0x8   :  { %1645 = vmatmul.mubr.msk.f32.vlgmr.msra.gmra.mxu0 %vm80_vm1, %v73_v15  ;;  %1646 = vmatmul.mubr.msk.f32.vlgmr.msra.gmra.mxu1 %vm80_vm1, %v73_v15  ;;  %v1886_v4 = vsub.s32 1, %v298_v2  ;;  %v1653_v5 = vld [vmem:[%s2379_s2 + $0x20] sm:$0xf]  ;;  %v1894_v9 = vsub.s32 0, %v298_v2  ;;  %v1652_v15 = vld [vmem:[%s2379_s2 + $0x1c] sm:$0xf] }
   0x9   :  { %711 = vmatprep.mubr.f32.mxu0 %v1699_v3  ;;  %782 = vmatprep.mubr.f32.mxu1 %v1699_v3 }
   0xa   :  { %v1892_v8 = vrot.slane %v1653_v5, %v1886_v4  ;;  %v1901_v14 = vrot.slane %v1653_v5, %v1894_v9 }
  0x7f   :  { %v78_v18 = vpop.permute.xlu0 %77 }
  0xc8   :  { %v150_v19 = vpop.f32.mrf.mxu0  ;;  %v221_v20 = vpop.f32.mrf.mxu1 }
  0xc9   :  { %v151_v22 = vadd.f32 %v150_v19, %v78_v18  ;;  %v222_v25 = vadd.f32 %v221_v20, %v78_v18  ;;  %v1911_v20 = vrot.slane %v1652_v15, %v1886_v4 }
  0xca   :  { %v152_v21 = vpop.f32.mrf.mxu0  ;;  %v223_v24 = vpop.f32.mrf.mxu1 }
  0xcb   :  { %v153_v23 = vadd.f32 %v152_v21, %v78_v18  ;;  %v224_v27 = vadd.f32 %v223_v24, %v78_v18  ;;  %v1916_v24 = vrot.slane %v1652_v15, %v1894_v9 }
  0xcd   :  { %v228_v26 = vadd.f32 %v153_v23, %v151_v22 }
  0xcf   :  { %v229_v28 = vadd.f32 %v228_v26, %v222_v25 }
  0xd1   :  { %v230_v29 = vadd.f32 %v229_v28, %v224_v27 }
  0xd3   :  { %231 = vadd.xlane.f32.xlu0 %v230_v29  ;;  %v1651_v29 = vld [vmem:[%s2379_s2 + $0x18] sm:$0xf] }
 0x15c   :  { %v232_v30 = vpop.xlane.xlu0 %231 }
 0x15d   :  { %v233_v31 = vmul.f32 0.001953125, %v232_v30 }
 0x15f   :  { %v234_v32 = vsub.f32 %v151_v22, %v233_v31  ;;  %v235_v33 = vsub.f32 %v153_v23, %v233_v31  ;;  %v236_v34 = vsub.f32 %v222_v25, %v233_v31  ;;  %v237_v35 = vsub.f32 %v224_v27, %v233_v31 }
 0x161   :  { %v238_v36 = vmul.f32 %v234_v32, %v234_v32  ;;  %v239_v37 = vmul.f32 %v235_v33, %v235_v33  ;;  %v240_v38 = vmul.f32 %v236_v34, %v236_v34  ;;  %v241_v40 = vmul.f32 %v237_v35, %v237_v35 }
 0x163   :  { %v242_v39 = vadd.f32 %v239_v37, %v238_v36 }
 0x165   :  { %v243_v41 = vadd.f32 %v242_v39, %v240_v38 }
 0x167   :  { %v244_v42 = vadd.f32 %v243_v41, %v241_v40 }
 0x169   :  { %245 = vadd.xlane.f32.xlu1 %v244_v42 }
 0x1f2   :  { %v246_v43 = vpop.xlane.xlu1 %245 }
 0x1f3   :  { %v247_v44 = vmul.f32 0.001953125, %v246_v43 }
 0x1f5   :  { %v248_v45 = vadd.f32 1e-05, %v247_v44 }
 0x1f7   :  { %1695 = vrsqrt.f32 %v248_v45  ;;  %v1650_v45 = vld [vmem:[%s2379_s2 + $0x14] sm:$0xf] }
 0x204   :  { %v1696_v47 = vpop.eup %1695 }
 0x205   :  { %v250_v48 = vmul.f32 %v1696_v47, %v226_v46 }
 0x207   :  { %253 = vperm.xlu1 %1690, %v250_v48  }
 0x20b   :  { %262 = vperm.xlu1 %1690, %v227_v49  }
 0x282   :  { %v254_v50 = vpop.permute.xlu1 %253 }
 0x283   :  { %v257_v51 = vmul.f32 %v254_v50, %v235_v33  ;;  %v256_v53 = vmul.f32 %v254_v50, %v234_v32  ;;  %v258_v54 = vmul.f32 %v254_v50, %v236_v34  ;;  %v259_v61 = vmul.f32 %v254_v50, %v237_v35 }
 0x284   :  { %v1926_v32 = vrot.slane %v1651_v29, %v1886_v4  ;;  %v1929_v33 = vrot.slane %v1651_v29, %v1894_v9  ;;  %v1931_v34 = vsub.s32 2, %v298_v2  ;;  %v1933_v35 = vsub.s32 3, %v298_v2 }
 0x285   :  { %v1954_v50 = vrot.slane %v1650_v45, %v1894_v9 }
 0x286   :  { %v263_v52 = vpop.permute.xlu1 %262  ;;  %v1940_v40 = vrot.slane %v1653_v5, %v1931_v34  ;;  %v1943_v41 = vrot.slane %v1653_v5, %v1933_v35 }
 0x287   :  { %v266_v55 = vadd.f32 %v263_v52, %v257_v51  ;;  %v265_v56 = vadd.f32 %v263_v52, %v256_v53  ;;  %v267_v57 = vadd.f32 %v263_v52, %v258_v54  ;;  %v268_v62 = vadd.f32 %v263_v52, %v259_v61 }
 0x288   :  { %v1957_v51 = vrot.slane %v1650_v45, %v1886_v4  ;;  %v1965_v61 = vrot.slane %v1652_v15, %v1931_v34 }
 0x289   :  { %v1811_v58 = vmax.f32 %v266_v55, 0.0  ;;  %v1817_v59 = vmax.f32 %v265_v56, 0.0  ;;  %v1819_v60 = vmax.f32 %v267_v57, 0.0  ;;  %v1837_v63 = vmax.f32 %v268_v62, 0.0 }
 0x28a   :  { %v1968_v62 = vrot.slane %v1652_v15, %v1933_v35  ;;  %v1989_v15 = vrot.slane %v1650_v45, %v1933_v35 }
 0x28b   :  { %548 = vrot.lane.b32.xlu0 %v1811_v58, %s1701_s20  ;;  %593 = vrot.lane.b32.xlu1 %v1811_v58, %s1702_s5 }
 0x28f   :  { %595 = vrot.lane.b32.xlu1 %v1819_v60, %s1702_s5  ;;  %501 = vrot.lane.b32.xlu0 %v1817_v59, %s1703_s6 }
 0x293   :  { %460 = vrot.lane.b32.xlu0 %v1819_v60, %s1704_s21  ;;  %591 = vrot.lane.b32.xlu1 %v1817_v59, %s1702_s5 }
 0x297   :  { %456 = vrot.lane.b32.xlu0 %v1817_v59, %s1704_s21  ;;  %550 = vrot.lane.b32.xlu1 %v1819_v60, %s1701_s20 }
 0x29b   :  { %414 = vrot.lane.b32.xlu0 %v1817_v59, %s1705_s22  ;;  %546 = vrot.lane.b32.xlu1 %v1817_v59, %s1701_s20 }
 0x29f   :  { %462 = vrot.lane.b32.xlu0 %v1837_v63, %s1704_s21  ;;  %503 = vrot.lane.b32.xlu1 %v1811_v58, %s1703_s6 }
 0x2a3   :  { %369 = vrot.lane.b32.xlu0 %v1817_v59, %s1706_s23  ;;  %505 = vrot.lane.b32.xlu1 %v1819_v60, %s1703_s6 }
 0x2a7   :  { %366 = vrot.lane.b32.xlu0 %v1837_v63, %s1706_s23  ;;  %597 = vrot.lane.b32.xlu1 %v1837_v63, %s1702_s5 }
 0x2ab   :  { %326 = vrot.lane.b32.xlu0 %v1811_v58, %s1707_s24  ;;  %458 = vrot.lane.b32.xlu1 %v1811_v58, %s1704_s21 }
 0x2af   :  { %321 = vrot.lane.b32.xlu0 %v1837_v63, %s1707_s24  ;;  %552 = vrot.lane.b32.xlu1 %v1837_v63, %s1701_s20 }
 0x2b3   :  { %282 = vrot.lane.b32.xlu0 %v1811_v58, %s1708_s25  ;;  %507 = vrot.lane.b32.xlu1 %v1837_v63, %s1703_s6 }
 0x2b7   :  { %274 = vrot.lane.b32.xlu0 %v1837_v63, %s1708_s25  ;;  %416 = vrot.lane.b32.xlu1 %v1811_v58, %s1705_s22 }
 0x2bb   :  { %284 = vrot.lane.b32.xlu0 %v1819_v60, %s1708_s25  ;;  %411 = vrot.lane.b32.xlu1 %v1837_v63, %s1705_s22 }
 0x2bf   :  { %371 = vrot.lane.b32.xlu1 %v1811_v58, %s1706_s23 }
 0x2c3   :  { %324 = vrot.lane.b32.xlu1 %v1817_v59, %s1707_s24 }
 0x2c7   :  { %418 = vrot.lane.b32.xlu1 %v1819_v60, %s1705_s22 }
 0x2cb   :  { %280 = vrot.lane.b32.xlu1 %v1817_v59, %s1708_s25 }
 0x2cf   :  { %373 = vrot.lane.b32.xlu1 %v1819_v60, %s1706_s23 }
 0x2d3   :  { %328 = vrot.lane.b32.xlu1 %v1819_v60, %s1707_s24 }
 0x2d7   :  { %640 = vperm.xlu1 %1690, %v637_v0  }
 0x2fd   :  { %v549_v6 = vpop.permute.xlu0 %548  ;;  %v594_v7 = vpop.permute.xlu1 %593 }
 0x301   :  { %v596_v10 = vpop.permute.xlu1 %595  ;;  %v1896_v11 = vpop.permute.xlu0 %501 }
 0x302   :  { %v601_v12 = vsel %vm599_vm2, %v594_v7, %v596_v10 }
 0x303   :  { %v633_v13 = vmul.f32 %v1892_v8, %v601_v12  ;;  %v1649_v12 = vld [vmem:[%s2379_s2 + $0xc] sm:$0xf] }
 0x305   :  { %661 = vmatprep.subr.mxu0 %v633_v13  ;;  %v592_v16 = vpop.permute.xlu1 %591  ;;  %v1907_v18 = vpop.permute.xlu0 %460  ;;  %v1986_v13 = vrot.slane %v1650_v45, %v1931_v34 }
 0x306   :  { %v600_v17 = vsel %vm599_vm2, %v592_v16, %v594_v7  ;;  %v1976_v7 = vrot.slane %v1651_v29, %v1931_v34 }
 0x307   :  { %v632_v19 = vmul.f32 %v1901_v14, %v600_v17 }
 0x309   :  { %662 = vmatpush1.msra.mxu0 %v632_v19  ;;  %v551_v21 = vpop.permute.xlu1 %550  ;;  %v457_v25 = vpop.permute.xlu0 %456 }
 0x30a   :  { %v556_v22 = vsel %vm554_vm3, %v549_v6, %v551_v21 }
 0x30b   :  { %v588_v23 = vmul.f32 %v1911_v20, %v556_v22 }
 0x30d   :  { %663 = vmatprep.subr.mxu0 %v588_v23  ;;  %v547_v26 = vpop.permute.xlu1 %546  ;;  %v1923_v31 = vpop.permute.xlu0 %414 }
 0x30e   :  { %v555_v27 = vsel %vm554_vm3, %v547_v26, %v549_v6 }
 0x30f   :  { %v587_v28 = vmul.f32 %v1916_v24, %v555_v27 }
 0x311   :  { %664 = vmatpush1.msra.mxu0 %v587_v28  ;;  %v504_v30 = vpop.permute.xlu1 %503  ;;  %v463_v43 = vpop.permute.xlu0 %462 }
 0x312   :  { %v510_v36 = vsel %vm509_vm4, %v1896_v11, %v504_v30  ;;  %v473_v17 = vsel %vm464_vm5, %v463_v43, %v457_v25 }
 0x313   :  { %v542_v42 = vmul.f32 %v1929_v33, %v510_v36  ;;  %v500_v27 = vmul.f32 %v1989_v15, %v473_v17  ;;  %v1648_v36 = vld [vmem:[%s2379_s2 + $0x8] sm:$0xf] }
 0x315   :  { %v506_v37 = vpop.permute.xlu1 %505  ;;  %v370_v55 = vpop.permute.xlu0 %369 }
 0x316   :  { %v511_v38 = vsel %vm509_vm4, %v504_v30, %v506_v37  ;;  %v2012_v30 = vrot.slane %v1649_v12, %v1894_v9 }
 0x317   :  { %v543_v39 = vmul.f32 %v1926_v32, %v511_v38 }
 0x319   :  { %665 = vmatprep.subr.mxu0 %v543_v39  ;;  %v598_v44 = vpop.permute.xlu1 %597 }
 0x31a   :  { %v602_v46 = vsel %vm599_vm2, %v596_v10, %v598_v44  ;;  %v608_v47 = vsel %vm599_vm2, %v598_v44, %v592_v16  ;;  %666 = vmatpush1.msra.mxu0 %v542_v42  ;;  %v1979_v10 = vrot.slane %v1651_v29, %v1933_v35  ;;  %v1991_v16 = vpop.permute.xlu0 %366  ;;  %v2023_v42 = vrot.slane %v1648_v36, %v1886_v4  ;;  %v1647_v44 = vld [vmem:[%s2379_s2 + $0x4] sm:$0xf] }
 0x31b   :  { %v634_v48 = vmul.f32 %v1940_v40, %v602_v46  ;;  %v635_v49 = vmul.f32 %v1943_v41, %v608_v47  ;;  %v2036_v47 = vrot.slane %v1647_v44, %v1894_v9 }
 0x31d   :  { %732 = vmatprep.subr.mxu1 %v635_v49  ;;  %v459_v52 = vpop.permute.xlu1 %458 }
 0x31e   :  { %v465_v53 = vsel %vm464_vm5, %v457_v25, %v459_v52  ;;  %v466_v54 = vsel %vm464_vm5, %v459_v52, %v1907_v18  ;;  %733 = vmatpush1.msra.mxu1 %v634_v48  ;;  %v2008_v29 = vpop.permute.xlu0 %326  ;;  %v2039_v48 = vrot.slane %v1647_v44, %v1886_v4 }
 0x31f   :  { %v497_v56 = vmul.f32 %v1954_v50, %v465_v53  ;;  %v498_v57 = vmul.f32 %v1957_v51, %v466_v54 }
 0x321   :  { %667 = vmatprep.subr.mxu0 %v498_v57  ;;  %v553_v0 = vpop.permute.xlu1 %552 }
 0x322   :  { %v557_v1 = vsel %vm554_vm3, %v551_v21, %v553_v0  ;;  %v563_v2 = vsel %vm554_vm3, %v553_v0, %v547_v26  ;;  %668 = vmatpush1.msra.mxu0 %v497_v56  ;;  %v467_v21 = vsel %vm464_vm5, %v1907_v18, %v463_v43  ;;  %v2002_v26 = vrot.slane %v1649_v12, %v1886_v4  ;;  %v322_v45 = vpop.permute.xlu0 %321 }
 0x323   :  { %v589_v5 = vmul.f32 %v1965_v61, %v557_v1  ;;  %v590_v6 = vmul.f32 %v1968_v62, %v563_v2  ;;  %669 = vmatprep.subr.mxu0 %v1811_v58  ;;  %v499_v28 = vmul.f32 %v1986_v13, %v467_v21  ;;  %v2026_v43 = vrot.slane %v1648_v36, %v1894_v9 }
 0x324   :  { %670 = vmatpush1.msra.mxu0 %v1817_v59  ;;  %v2048_v0 = vrot.slane %v1649_v12, %v1931_v34  ;;  %v2051_v1 = vrot.slane %v1649_v12, %v1933_v35 }
 0x325   :  { %734 = vmatprep.subr.mxu1 %v590_v6  ;;  %v508_v58 = vpop.permute.xlu1 %507 }
 0x326   :  { %v512_v19 = vsel %vm509_vm4, %v506_v37, %v508_v58  ;;  %v518_v59 = vsel %vm509_vm4, %v508_v58, %v1896_v11  ;;  %735 = vmatpush1.msra.mxu1 %v589_v5  ;;  %v295_v5 = vld [vmem:[%s2379_s2] sm:$0xf] }
 0x327   :  { %v544_v22 = vmul.f32 %v1976_v7, %v512_v19  ;;  %v545_v23 = vmul.f32 %v1979_v10, %v518_v59  ;;  %v2061_v59 = vrot.slane %v295_v5, %v1894_v9  ;;  %v2064_v12 = vrot.slane %v295_v5, %v1886_v4  ;;  %v636_v4 = vld [vmem:[%s2380_s7] sm:$0xff] }
 0x328   :  { %v2074_v9 = vrot.slane %v1648_v36, %v1933_v35 }
 0x329   :  { %736 = vmatprep.subr.mxu1 %v545_v23  ;;  %v417_v25 = vpop.permute.xlu1 %416 }
 0x32a   :  { %v421_v11 = vsel %vm420_vm6, %v1923_v31, %v417_v25  ;;  %737 = vmatpush1.msra.mxu1 %v544_v22 }
 0x32b   :  { %v453_v18 = vmul.f32 %v2002_v26, %v421_v11  ;;  %738 = vmatprep.subr.mxu1 %v500_v27  ;;  %v2071_v11 = vrot.slane %v1648_v36, %v1931_v34  ;;  %v2086_v36 = vrot.slane %v1647_v44, %v1931_v34 }
 0x32c   :  { %739 = vmatpush1.msra.mxu1 %v499_v28 }
 0x32d   :  { %671 = vmatprep.subr.mxu0 %v453_v18  ;;  %740 = vmatprep.subr.mxu1 %v1837_v63  ;;  %v412_v37 = vpop.permute.xlu1 %411  ;;  %v383_v63 = vsel %vm375_vm7, %v1991_v16, %v370_v55 }
 0x32e   :  { %v428_v38 = vsel %vm420_vm6, %v412_v37, %v1923_v31  ;;  %741 = vmatpush1.msra.mxu1 %v1819_v60  ;;  %v407_v49 = vmul.f32 %v2026_v43, %v383_v63 }
 0x32f   :  { %v452_v39 = vmul.f32 %v2012_v30, %v428_v38 }
 0x331   :  { %672 = vmatpush1.msra.mxu0 %v452_v39  ;;  %v372_v31 = vpop.permute.xlu1 %371 }
 0x332   :  { %v376_v60 = vsel %vm375_vm7, %v370_v55, %v372_v31  ;;  %v283_v55 = vpop.permute.xlu0 %282 }
 0x333   :  { %v408_v46 = vmul.f32 %v2023_v42, %v376_v60 }
 0x335   :  { %673 = vmatprep.subr.mxu0 %v408_v46  ;;  %v325_v52 = vpop.permute.xlu1 %324  ;;  %v2089_v46 = vrot.slane %v1647_v44, %v1933_v35 }
 0x336   :  { %v331_v53 = vsel %vm330_vm8, %v325_v52, %v2008_v29  ;;  %v338_v54 = vsel %vm330_vm8, %v322_v45, %v325_v52  ;;  %674 = vmatpush1.msra.mxu0 %v407_v49  ;;  %v275_v21 = vpop.permute.xlu0 %274  ;;  %v2096_v49 = vrot.slane %v295_v5, %v1931_v34 }
 0x337   :  { %v362_v56 = vmul.f32 %v2036_v47, %v338_v54  ;;  %v363_v57 = vmul.f32 %v2039_v48, %v331_v53 }
 0x339   :  { %675 = vmatprep.subr.mxu0 %v363_v57  ;;  %v419_v2 = vpop.permute.xlu1 %418 }
 0x33a   :  { %v422_v6 = vsel %vm420_vm6, %v417_v25, %v419_v2  ;;  %v423_v58 = vsel %vm420_vm6, %v419_v2, %v412_v37  ;;  %676 = vmatpush1.msra.mxu0 %v362_v56  ;;  %v285_v39 = vpop.permute.xlu0 %284 }
 0x33b   :  { %v454_v17 = vmul.f32 %v2048_v0, %v422_v6  ;;  %v455_v19 = vmul.f32 %v2051_v1, %v423_v58  ;;  %v289_v52 = vsel %vm286_vm9, %v285_v39, %v275_v21  ;;  %v288_v44 = vsel %vm286_vm9, %v283_v55, %v285_v39 }
 0x33c   :  { %v319_v34 = vmul.f32 %v2096_v49, %v288_v44 }
 0x33d   :  { %742 = vmatprep.subr.mxu1 %v455_v19  ;;  %v281_v22 = vpop.permute.xlu1 %280 }
 0x33e   :  { %v287_v23 = vsel %vm286_vm9, %v281_v22, %v283_v55  ;;  %v294_v27 = vsel %vm286_vm9, %v275_v21, %v281_v22  ;;  %743 = vmatpush1.msra.mxu1 %v454_v17 }
 0x33f   :  { %v317_v25 = vmul.f32 %v2061_v59, %v294_v27  ;;  %v318_v28 = vmul.f32 %v2064_v12, %v287_v23 }
 0x341   :  { %677 = vmatprep.subr.mxu0 %v318_v28  ;;  %v374_v18 = vpop.permute.xlu1 %373 }
 0x342   :  { %v377_v37 = vsel %vm375_vm7, %v372_v31, %v374_v18  ;;  %v378_v38 = vsel %vm375_vm7, %v374_v18, %v1991_v16  ;;  %678 = vmatpush1.msra.mxu0 %v317_v25  ;;  %v2093_v31 = vrot.slane %v295_v5, %v1933_v35 }
 0x343   :  { %v409_v63 = vmul.f32 %v2071_v11, %v377_v37  ;;  %v410_v60 = vmul.f32 %v2074_v9, %v378_v38  ;;  %1654 = vmatmul.mubr.msk.f32.vlgmr.msra.gmra.mxu0 %vm643_vm10, %v636_v4 }
 0x344   :  { %1083 = vmatprep.mubr.f32.mxu0 %v1699_v3  ;;  %v320_v57 = vmul.f32 %v2093_v31, %v289_v52 }
 0x345   :  { %744 = vmatprep.subr.mxu1 %v410_v60  ;;  %v329_v16 = vpop.permute.xlu1 %328 }
 0x346   :  { %v332_v53 = vsel %vm330_vm8, %v2008_v29, %v329_v16  ;;  %v333_v54 = vsel %vm330_vm8, %v329_v16, %v322_v45  ;;  %745 = vmatpush1.msra.mxu1 %v409_v63 }
 0x347   :  { %v364_v56 = vmul.f32 %v2086_v36, %v332_v53  ;;  %v365_v35 = vmul.f32 %v2089_v46, %v333_v54  ;;  %v790_v54 = vld [vmem:[%s2381_s10] sm:$0xff] }
 0x349   :  { %746 = vmatprep.subr.mxu1 %v365_v35 }
 0x34a   :  { %747 = vmatpush1.msra.mxu1 %v364_v56 }
 0x34b   :  { %748 = vmatprep.subr.mxu1 %v320_v57  ;;  %v789_v57 = vld [vmem:[%s2382_s9] sm:$0xff] }
 0x34c   :  { %749 = vmatpush1.msra.mxu1 %v319_v34 }
 0x34d   :  { %1655 = vmatmul.mubr.msk.f32.vlgmr.msra.gmra.mxu1 %vm643_vm10, %v636_v4 }
 0x34e   :  { %1154 = vmatprep.mubr.f32.mxu1 %v1699_v3 }
 0x352   :  { %v641_v2 = vpop.permute.xlu1 %640 }
 0x403   :  { %v713_v29 = vpop.f32.mrf.mxu0 }
 0x404   :  { %v714_v5 = vadd.f32 %v713_v29, %v641_v2 }
 0x405   :  { %v715_v45 = vpop.f32.mrf.mxu0 }
 0x406   :  { %v716_v55 = vadd.f32 %v715_v45, %v641_v2 }
 0x408   :  { %v791_v58 = vadd.f32 %v716_v55, %v714_v5 }
 0x40d   :  { %v784_v6 = vpop.f32.mrf.mxu1 }
 0x40e   :  { %v785_v17 = vadd.f32 %v784_v6, %v641_v2 }
 0x40f   :  { %v786_v19 = vpop.f32.mrf.mxu1 }
 0x410   :  { %v792_v21 = vadd.f32 %v791_v58, %v785_v17  ;;  %v787_v22 = vadd.f32 %v786_v19, %v641_v2 }
 0x412   :  { %v793_v23 = vadd.f32 %v792_v21, %v787_v22 }
 0x414   :  { %794 = vadd.xlane.f32.xlu0 %v793_v23 }
 0x49d   :  { %v795_v27 = vpop.xlane.xlu0 %794 }
 0x49e   :  { %v796_v25 = vmul.f32 0.001953125, %v795_v27 }
 0x4a0   :  { %v797_v28 = vsub.f32 %v714_v5, %v796_v25  ;;  %v798_v18 = vsub.f32 %v716_v55, %v796_v25  ;;  %v799_v4 = vsub.f32 %v785_v17, %v796_v25  ;;  %v800_v37 = vsub.f32 %v787_v22, %v796_v25 }
 0x4a2   :  { %v801_v38 = vmul.f32 %v797_v28, %v797_v28  ;;  %v802_v39 = vmul.f32 %v798_v18, %v798_v18  ;;  %v803_v63 = vmul.f32 %v799_v4, %v799_v4  ;;  %v804_v16 = vmul.f32 %v800_v37, %v800_v37 }
 0x4a4   :  { %v805_v60 = vadd.f32 %v802_v39, %v801_v38 }
 0x4a6   :  { %v806_v52 = vadd.f32 %v805_v60, %v803_v63 }
 0x4a8   :  { %v807_v53 = vadd.f32 %v806_v52, %v804_v16 }
 0x4aa   :  { %808 = vadd.xlane.f32.xlu1 %v807_v53 }
 0x4bb   :  { %825 = vperm.xlu1 %1690, %v790_v54  }
 0x533   :  { %v809_v44 = vpop.xlane.xlu1 %808 }
 0x534   :  { %v810_v56 = vmul.f32 0.001953125, %v809_v44 }
 0x536   :  { %v811_v35 = vadd.f32 1e-05, %v810_v56 }
 0x537   :  { %v826_v58 = vpop.permute.xlu1 %825 }
 0x538   :  { %1697 = vrsqrt.f32 %v811_v35 }
 0x545   :  { %v1698_v34 = vpop.eup %1697 }
 0x546   :  { %v813_v29 = vmul.f32 %v1698_v34, %v789_v57 }
 0x548   :  { %816 = vperm.xlu0 %1689, %v813_v29  }
 0x5c3   :  { %v817_v45 = vpop.permute.xlu0 %816 }
 0x5c4   :  { %v819_v2 = vmul.f32 %v817_v45, %v797_v28  ;;  %v820_v55 = vmul.f32 %v817_v45, %v798_v18  ;;  %v821_v5 = vmul.f32 %v817_v45, %v799_v4  ;;  %v822_v6 = vmul.f32 %v817_v45, %v800_v37  ;;  %v1009_v18 = vld [vmem:[%s2383_s12] sm:$0xff] }
 0x5c6   :  { %v828_v17 = vadd.f32 %v826_v58, %v819_v2  ;;  %v831_v19 = vadd.f32 %v826_v58, %v822_v6  ;;  %v829_v21 = vadd.f32 %v826_v58, %v820_v55  ;;  %v830_v22 = vadd.f32 %v826_v58, %v821_v5 }
 0x5c8   :  { %v2115_v23 = vmax.f32 %v828_v17, 0.0  ;;  %v2117_v27 = vmax.f32 %v831_v19, 0.0  ;;  %v2123_v25 = vmax.f32 %v829_v21, 0.0  ;;  %v2125_v28 = vmax.f32 %v830_v22, 0.0 }
 0x5ca   :  { %837 = vrot.lane.b32.xlu0 %v2117_v27, %s1708_s25  ;;  %843 = vrot.lane.b32.xlu1 %v2115_v23, %s1708_s25 }
 0x5ce   :  { %845 = vrot.lane.b32.xlu0 %v2123_v25, %s1708_s25  ;;  %847 = vrot.lane.b32.xlu1 %v2125_v28, %s1708_s25 }
 0x5d2   :  { %861 = vrot.lane.b32.xlu0 %v2117_v27, %s1707_s24  ;;  %864 = vrot.lane.b32.xlu1 %v2115_v23, %s1707_s24 }
 0x5d6   :  { %866 = vrot.lane.b32.xlu0 %v2123_v25, %s1707_s24  ;;  %868 = vrot.lane.b32.xlu1 %v2125_v28, %s1707_s24 }
 0x5da   :  { %903 = vrot.lane.b32.xlu0 %v2117_v27, %s1705_s22  ;;  %906 = vrot.lane.b32.xlu1 %v2115_v23, %s1705_s22 }
 0x5de   :  { %908 = vrot.lane.b32.xlu0 %v2123_v25, %s1705_s22  ;;  %910 = vrot.lane.b32.xlu1 %v2125_v28, %s1705_s22 }
 0x5e2   :  { %882 = vrot.lane.b32.xlu0 %v2117_v27, %s1706_s23  ;;  %885 = vrot.lane.b32.xlu1 %v2115_v23, %s1706_s23 }
 0x5e6   :  { %887 = vrot.lane.b32.xlu0 %v2123_v25, %s1706_s23  ;;  %889 = vrot.lane.b32.xlu1 %v2125_v28, %s1706_s23 }
 0x5ea   :  { %924 = vrot.lane.b32.xlu0 %v2115_v23, %s1704_s21  ;;  %926 = vrot.lane.b32.xlu1 %v2123_v25, %s1704_s21 }
 0x5ee   :  { %928 = vrot.lane.b32.xlu0 %v2125_v28, %s1704_s21  ;;  %930 = vrot.lane.b32.xlu1 %v2117_v27, %s1704_s21 }
 0x5f2   :  { %945 = vrot.lane.b32.xlu0 %v2115_v23, %s1703_s6  ;;  %947 = vrot.lane.b32.xlu1 %v2123_v25, %s1703_s6 }
 0x5f6   :  { %949 = vrot.lane.b32.xlu0 %v2125_v28, %s1703_s6  ;;  %951 = vrot.lane.b32.xlu1 %v2117_v27, %s1703_s6 }
 0x5fa   :  { %966 = vrot.lane.b32.xlu0 %v2115_v23, %s1701_s20  ;;  %968 = vrot.lane.b32.xlu1 %v2123_v25, %s1701_s20 }
 0x5fe   :  { %970 = vrot.lane.b32.xlu0 %v2125_v28, %s1701_s20  ;;  %972 = vrot.lane.b32.xlu1 %v2117_v27, %s1701_s20 }
 0x602   :  { %987 = vrot.lane.b32.xlu0 %v2115_v23, %s1702_s5  ;;  %989 = vrot.lane.b32.xlu1 %v2123_v25, %s1702_s5 }
 0x606   :  { %991 = vrot.lane.b32.xlu0 %v2125_v28, %s1702_s5  ;;  %993 = vrot.lane.b32.xlu1 %v2117_v27, %s1702_s5 }
 0x60a   :  { %1012 = vperm.xlu0 %1689, %v1009_v18   ;;  %1170 = vperm.xlu1 %1690, %v1009_v18  }
 0x60e   :  { %1328 = vperm.xlu0 %1689, %v1009_v18   ;;  %1486 = vperm.xlu1 %1690, %v1009_v18  }
 0x63c   :  { %v838_v4 = vpop.permute.xlu0 %837  ;;  %v844_v37 = vpop.permute.xlu1 %843 }
 0x63d   :  { %v856_v38 = vsel %vm286_vm9, %v838_v4, %v844_v37 }
 0x63e   :  { %v857_v56 = vmul.f32 %v856_v38, %v2061_v59 }
 0x640   :  { %v846_v39 = vpop.permute.xlu0 %845  ;;  %v848_v63 = vpop.permute.xlu1 %847 }
 0x641   :  { %v849_v60 = vsel %vm286_vm9, %v844_v37, %v846_v39  ;;  %v850_v16 = vsel %vm286_vm9, %v846_v39, %v848_v63  ;;  %v851_v52 = vsel %vm286_vm9, %v848_v63, %v838_v4 }
 0x642   :  { %v858_v53 = vmul.f32 %v849_v60, %v2064_v12  ;;  %v859_v54 = vmul.f32 %v850_v16, %v2096_v49  ;;  %v860_v44 = vmul.f32 %v851_v52, %v2093_v31 }
 0x644   :  { %v862_v35 = vpop.permute.xlu0 %861  ;;  %1043 = vmatprep.subr.mxu0 %v858_v53  ;;  %1114 = vmatprep.subr.mxu1 %v860_v44  ;;  %v865_v57 = vpop.permute.xlu1 %864 }
 0x645   :  { %1044 = vmatpush1.msra.mxu0 %v857_v56  ;;  %1115 = vmatpush1.msra.mxu1 %v859_v54  ;;  %v877_v34 = vsel %vm330_vm8, %v862_v35, %v865_v57 }
 0x646   :  { %v878_v5 = vmul.f32 %v877_v34, %v2036_v47 }
 0x648   :  { %v867_v29 = vpop.permute.xlu0 %866  ;;  %v869_v45 = vpop.permute.xlu1 %868 }
 0x649   :  { %v870_v2 = vsel %vm330_vm8, %v865_v57, %v867_v29  ;;  %v871_v12 = vsel %vm330_vm8, %v867_v29, %v869_v45  ;;  %v872_v49 = vsel %vm330_vm8, %v869_v45, %v862_v35 }
 0x64a   :  { %v879_v31 = vmul.f32 %v870_v2, %v2039_v48  ;;  %v880_v59 = vmul.f32 %v871_v12, %v2086_v36  ;;  %v881_v55 = vmul.f32 %v872_v49, %v2089_v46  ;;  %v1658_v12 = vld [vmem:[%s2384_s11 + $0x8] sm:$0xff] }
 0x64c   :  { %v904_v6 = vpop.permute.xlu0 %903  ;;  %1045 = vmatprep.subr.mxu0 %v879_v31  ;;  %1116 = vmatprep.subr.mxu1 %v881_v55  ;;  %v907_v58 = vpop.permute.xlu1 %906 }
 0x64d   :  { %1046 = vmatpush1.msra.mxu0 %v878_v5  ;;  %1117 = vmatpush1.msra.mxu1 %v880_v59  ;;  %v919_v17 = vsel %vm420_vm6, %v904_v6, %v907_v58 }
 0x64e   :  { %v2218_v4 = vmul.f32 %v919_v17, %v2012_v30 }
 0x650   :  { %v909_v19 = vpop.permute.xlu0 %908  ;;  %v911_v21 = vpop.permute.xlu1 %910 }
 0x651   :  { %v912_v22 = vsel %vm420_vm6, %v907_v58, %v909_v19  ;;  %v913_v48 = vsel %vm420_vm6, %v909_v19, %v911_v21  ;;  %v914_v36 = vsel %vm420_vm6, %v911_v21, %v904_v6 }
 0x652   :  { %v2211_v46 = vmul.f32 %v912_v22, %v2002_v26  ;;  %v2214_v47 = vmul.f32 %v913_v48, %v2048_v0  ;;  %v923_v18 = vmul.f32 %v914_v36, %v2051_v1  ;;  %v1008_v26 = vld [vmem:[%s2384_s11] sm:$0xff] }
 0x654   :  { %v883_v37 = vpop.permute.xlu0 %882  ;;  %1047 = vmatprep.subr.mxu0 %v2211_v46  ;;  %1118 = vmatprep.subr.mxu1 %v923_v18  ;;  %v886_v38 = vpop.permute.xlu1 %885 }
 0x655   :  { %1048 = vmatpush1.msra.mxu0 %v2218_v4  ;;  %1119 = vmatpush1.msra.mxu1 %v2214_v47  ;;  %v898_v30 = vsel %vm375_vm7, %v883_v37, %v886_v38 }
 0x656   :  { %1049 = vmatprep.subr.mxu0 %v2123_v25  ;;  %1120 = vmatprep.subr.mxu1 %v2117_v27  ;;  %v899_v54 = vmul.f32 %v898_v30, %v2026_v43 }
 0x657   :  { %1050 = vmatpush1.msra.mxu0 %v2115_v23  ;;  %1121 = vmatpush1.msra.mxu1 %v2125_v28 }
 0x658   :  { %v888_v0 = vpop.permute.xlu0 %887  ;;  %1656 = vmatmul.mubr.msk.f32.vlgmr.msra.gmra.mxu0 %vm1015_vm11, %v1008_v26  ;;  %1657 = vmatmul.mubr.msk.f32.vlgmr.msra.gmra.mxu1 %vm1015_vm11, %v1008_v26  ;;  %v890_v1 = vpop.permute.xlu1 %889 }
 0x659   :  { %v891_v39 = vsel %vm375_vm7, %v886_v38, %v888_v0  ;;  %1200 = vmatprep.subr.mxu0 %v879_v31  ;;  %1271 = vmatprep.subr.mxu1 %v881_v55  ;;  %v892_v63 = vsel %vm375_vm7, %v888_v0, %v890_v1  ;;  %v893_v60 = vsel %vm375_vm7, %v890_v1, %v883_v37 }
 0x65a   :  { %v900_v16 = vmul.f32 %v891_v39, %v2023_v42  ;;  %v901_v52 = vmul.f32 %v892_v63, %v2071_v11  ;;  %v902_v53 = vmul.f32 %v893_v60, %v2074_v9  ;;  %1201 = vmatpush1.msra.mxu0 %v878_v5  ;;  %1272 = vmatpush1.msra.mxu1 %v880_v59 }
 0x65b   :  { %1240 = vmatprep.mubr.f32.mxu0 %v1699_v3  ;;  %1311 = vmatprep.mubr.f32.mxu1 %v1699_v3 }
 0x65c   :  { %v925_v44 = vpop.permute.xlu0 %924  ;;  %1202 = vmatprep.subr.mxu0 %v900_v16  ;;  %1273 = vmatprep.subr.mxu1 %v902_v53  ;;  %v927_v56 = vpop.permute.xlu1 %926 }
 0x65d   :  { %1203 = vmatpush1.msra.mxu0 %v899_v54  ;;  %1274 = vmatpush1.msra.mxu1 %v901_v52  ;;  %v932_v42 = vsel %vm464_vm5, %v925_v44, %v927_v56 }
 0x65e   :  { %1204 = vmatprep.subr.mxu0 %v2123_v25  ;;  %1275 = vmatprep.subr.mxu1 %v2117_v27  ;;  %v2260_v2 = vmul.f32 %v932_v42, %v1954_v50 }
 0x65f   :  { %1205 = vmatpush1.msra.mxu0 %v2115_v23  ;;  %1276 = vmatpush1.msra.mxu1 %v2125_v28 }
 0x660   :  { %v929_v43 = vpop.permute.xlu0 %928  ;;  %v931_v11 = vpop.permute.xlu1 %930 }
 0x661   :  { %v933_v9 = vsel %vm464_vm5, %v927_v56, %v929_v43  ;;  %v934_v35 = vsel %vm464_vm5, %v929_v43, %v931_v11  ;;  %v940_v57 = vsel %vm464_vm5, %v931_v11, %v925_v44 }
 0x662   :  { %v2251_v34 = vmul.f32 %v933_v9, %v1957_v51  ;;  %v2254_v29 = vmul.f32 %v934_v35, %v1986_v13  ;;  %v2257_v45 = vmul.f32 %v940_v57, %v1989_v15 }
 0x664   :  { %v946_v49 = vpop.permute.xlu0 %945  ;;  %1206 = vmatprep.subr.mxu0 %v2251_v34  ;;  %1277 = vmatprep.subr.mxu1 %v2257_v45  ;;  %v948_v51 = vpop.permute.xlu1 %947 }
 0x665   :  { %1207 = vmatpush1.msra.mxu0 %v2260_v2  ;;  %1278 = vmatpush1.msra.mxu1 %v2254_v29  ;;  %v953_v50 = vsel %vm509_vm4, %v946_v49, %v948_v51 }
 0x666   :  { %1659 = vmatmul.mubr.msk.f32.vlgmr.msra.gmra.mxu0 %vm1015_vm11, %v1658_v12  ;;  %1660 = vmatmul.mubr.msk.f32.vlgmr.msra.gmra.mxu1 %vm1015_vm11, %v1658_v12  ;;  %v962_v17 = vmul.f32 %v953_v50, %v1929_v33 }
 0x667   :  { %1358 = vmatprep.subr.mxu0 %v2211_v46  ;;  %1429 = vmatprep.subr.mxu1 %v923_v18 }
 0x668   :  { %1359 = vmatpush1.msra.mxu0 %v2218_v4  ;;  %1430 = vmatpush1.msra.mxu1 %v2214_v47  ;;  %v950_v13 = vpop.permute.xlu0 %949  ;;  %v952_v15 = vpop.permute.xlu1 %951  ;;  %v1665_v4 = vld [vmem:[%s2384_s11 + $0x10] sm:$0xff] }
 0x669   :  { %v954_v31 = vsel %vm509_vm4, %v948_v51, %v950_v13  ;;  %1360 = vmatprep.subr.mxu0 %v2123_v25  ;;  %1431 = vmatprep.subr.mxu1 %v2117_v27  ;;  %v955_v59 = vsel %vm509_vm4, %v950_v13, %v952_v15  ;;  %v961_v55 = vsel %vm509_vm4, %v952_v15, %v946_v49 }
 0x66a   :  { %v963_v5 = vmul.f32 %v954_v31, %v1926_v32  ;;  %v964_v6 = vmul.f32 %v955_v59, %v1976_v7  ;;  %v965_v58 = vmul.f32 %v961_v55, %v1979_v10  ;;  %1361 = vmatpush1.msra.mxu0 %v2115_v23  ;;  %1432 = vmatpush1.msra.mxu1 %v2125_v28 }
 0x66b   :  { %1398 = vmatprep.mubr.f32.mxu0 %v1699_v3  ;;  %1469 = vmatprep.mubr.f32.mxu1 %v1699_v3 }
 0x66c   :  { %v967_v19 = vpop.permute.xlu0 %966  ;;  %1362 = vmatprep.subr.mxu0 %v963_v5  ;;  %1433 = vmatprep.subr.mxu1 %v965_v58  ;;  %v969_v21 = vpop.permute.xlu1 %968 }
 0x66d   :  { %1363 = vmatpush1.msra.mxu0 %v962_v17  ;;  %1434 = vmatpush1.msra.mxu1 %v964_v6  ;;  %v974_v32 = vsel %vm554_vm3, %v967_v19, %v969_v21 }
 0x66e   :  { %v983_v18 = vmul.f32 %v974_v32, %v1916_v24 }
 0x670   :  { %v971_v7 = vpop.permute.xlu0 %970  ;;  %v973_v10 = vpop.permute.xlu1 %972 }
 0x671   :  { %v975_v22 = vsel %vm554_vm3, %v969_v21, %v971_v7  ;;  %v976_v48 = vsel %vm554_vm3, %v971_v7, %v973_v10  ;;  %v982_v33 = vsel %vm554_vm3, %v973_v10, %v967_v19 }
 0x672   :  { %v984_v36 = vmul.f32 %v975_v22, %v1911_v20  ;;  %v985_v46 = vmul.f32 %v976_v48, %v1965_v61  ;;  %v986_v47 = vmul.f32 %v982_v33, %v1968_v62 }
 0x674   :  { %v988_v37 = vpop.permute.xlu0 %987  ;;  %1364 = vmatprep.subr.mxu0 %v984_v36  ;;  %1435 = vmatprep.subr.mxu1 %v986_v47  ;;  %v990_v38 = vpop.permute.xlu1 %989 }
 0x675   :  { %1365 = vmatpush1.msra.mxu0 %v983_v18  ;;  %1436 = vmatpush1.msra.mxu1 %v985_v46  ;;  %v995_v20 = vsel %vm599_vm2, %v988_v37, %v990_v38 }
 0x676   :  { %1666 = vmatmul.mubr.msk.f32.vlgmr.msra.gmra.mxu0 %vm1015_vm11, %v1665_v4  ;;  %1667 = vmatmul.mubr.msk.f32.vlgmr.msra.gmra.mxu1 %vm1015_vm11, %v1665_v4 }
 0x677   :  { %1516 = vmatprep.subr.mxu0 %v2123_v25  ;;  %1587 = vmatprep.subr.mxu1 %v2117_v27 }
 0x678   :  { %1517 = vmatpush1.msra.mxu0 %v2115_v23  ;;  %1588 = vmatpush1.msra.mxu1 %v2125_v28  ;;  %v992_v24 = vpop.permute.xlu0 %991  ;;  %v994_v61 = vpop.permute.xlu1 %993  ;;  %v1004_v28 = vmul.f32 %v995_v20, %v1901_v14 }
 0x679   :  { %v996_v62 = vsel %vm599_vm2, %v990_v38, %v992_v24  ;;  %1518 = vmatprep.subr.mxu0 %v2251_v34  ;;  %1589 = vmatprep.subr.mxu1 %v2257_v45  ;;  %v997_v26 = vsel %vm599_vm2, %v992_v24, %v994_v61  ;;  %v1003_v25 = vsel %vm599_vm2, %v994_v61, %v988_v37 }
 0x67a   :  { %v1005_v27 = vmul.f32 %v996_v62, %v1892_v8  ;;  %v1007_v30 = vmul.f32 %v1003_v25, %v1943_v41  ;;  %1519 = vmatpush1.msra.mxu0 %v2260_v2  ;;  %1590 = vmatpush1.msra.mxu1 %v2254_v29  ;;  %v1006_v23 = vmul.f32 %v997_v26, %v1940_v40  ;;  %v1672_v8 = vld [vmem:[%s2384_s11 + $0x18] sm:$0xff] }
 0x67b   :  { %1520 = vmatprep.subr.mxu0 %v984_v36  ;;  %1591 = vmatprep.subr.mxu1 %v986_v47 }
 0x67c   :  { %1521 = vmatpush1.msra.mxu0 %v983_v18  ;;  %1592 = vmatpush1.msra.mxu1 %v985_v46 }
 0x67d   :  { %1522 = vmatprep.subr.mxu0 %v1005_v27  ;;  %1593 = vmatprep.subr.mxu1 %v1007_v30 }
 0x67e   :  { %1523 = vmatpush1.msra.mxu0 %v1004_v28  ;;  %1556 = vmatprep.mubr.f32.mxu0 %v1699_v3 }
 0x67f   :  { %1594 = vmatpush1.msra.mxu1 %v1006_v23  ;;  %1627 = vmatprep.mubr.f32.mxu1 %v1699_v3 }
 0x680   :  { %1673 = vmatmul.mubr.msk.f32.vlgmr.msra.gmra.mxu0 %vm1015_vm11, %v1672_v8  ;;  %1674 = vmatmul.mubr.msk.f32.vlgmr.msra.gmra.mxu1 %vm1015_vm11, %v1672_v8 }
 0x685   :  { %v1013_v40 = vpop.permute.xlu0 %1012  ;;  %v1171_v16 = vpop.permute.xlu1 %1170 }
 0x689   :  { %v1329_v9 = vpop.permute.xlu0 %1328  ;;  %v1487_v51 = vpop.permute.xlu1 %1486 }
 0x718   :  { %v1085_v14 = vpop.f32.mrf.mxu0  ;;  %v1156_v41 = vpop.f32.mrf.mxu1 }
 0x719   :  { %v1086_v0 = vadd.f32 %v1085_v14, %v1013_v40  ;;  %v1157_v1 = vadd.f32 %v1156_v41, %v1013_v40 }
 0x71a   :  { %v1087_v39 = vpop.f32.mrf.mxu0  ;;  %v1158_v63 = vpop.f32.mrf.mxu1 }
 0x71b   :  { %1161 = vst [vmem:[%s2385_s13] sm:$0xff] %v1086_v0  ;;  %1163 = vst [vmem:[%s2385_s13 + $0x10] sm:$0xff] %v1157_v1  ;;  %v1088_v3 = vadd.f32 %v1087_v39, %v1013_v40  ;;  %v1159_v60 = vadd.f32 %v1158_v63, %v1013_v40 }
 0x71d   :  { %1162 = vst [vmem:[%s2385_s13 + $0x8] sm:$0xff] %v1088_v3  ;;  %1164 = vst [vmem:[%s2385_s13 + $0x18] sm:$0xff] %v1159_v60 }
 0x726   :  { %v1242_v52 = vpop.f32.mrf.mxu0  ;;  %v1313_v53 = vpop.f32.mrf.mxu1 }
 0x727   :  { %v1243_v54 = vadd.f32 %v1242_v52, %v1171_v16  ;;  %v1314_v44 = vadd.f32 %v1313_v53, %v1171_v16 }
 0x728   :  { %v1244_v56 = vpop.f32.mrf.mxu0  ;;  %v1315_v42 = vpop.f32.mrf.mxu1 }
 0x729   :  { %1661 = vst [vmem:[%s2385_s13 + $0x20] sm:$0xff] %v1243_v54  ;;  %1663 = vst [vmem:[%s2385_s13 + $0x30] sm:$0xff] %v1314_v44  ;;  %v1245_v43 = vadd.f32 %v1244_v56, %v1171_v16  ;;  %v1316_v11 = vadd.f32 %v1315_v42, %v1171_v16 }
 0x72b   :  { %1662 = vst [vmem:[%s2385_s13 + $0x28] sm:$0xff] %v1245_v43  ;;  %1664 = vst [vmem:[%s2385_s13 + $0x38] sm:$0xff] %v1316_v11 }
 0x736   :  { %v1400_v35 = vpop.f32.mrf.mxu0  ;;  %v1471_v57 = vpop.f32.mrf.mxu1 }
 0x737   :  { %v1401_v34 = vadd.f32 %v1400_v35, %v1329_v9  ;;  %v1472_v29 = vadd.f32 %v1471_v57, %v1329_v9 }
 0x738   :  { %v1402_v45 = vpop.f32.mrf.mxu0  ;;  %v1473_v2 = vpop.f32.mrf.mxu1 }
 0x739   :  { %1668 = vst [vmem:[%s2385_s13 + $0x40] sm:$0xff] %v1401_v34  ;;  %1670 = vst [vmem:[%s2385_s13 + $0x50] sm:$0xff] %v1472_v29  ;;  %v1403_v12 = vadd.f32 %v1402_v45, %v1329_v9  ;;  %v1474_v49 = vadd.f32 %v1473_v2, %v1329_v9 }
 0x73b   :  { %1669 = vst [vmem:[%s2385_s13 + $0x48] sm:$0xff] %v1403_v12  ;;  %1671 = vst [vmem:[%s2385_s13 + $0x58] sm:$0xff] %v1474_v49 }
 0x740   :  { %v1558_v50 = vpop.f32.mrf.mxu0  ;;  %v1629_v13 = vpop.f32.mrf.mxu1 }
 0x741   :  { %v1559_v15 = vadd.f32 %v1558_v50, %v1487_v51  ;;  %v1630_v31 = vadd.f32 %v1629_v13, %v1487_v51 }
 0x742   :  { %v1560_v59 = vpop.f32.mrf.mxu0  ;;  %v1631_v55 = vpop.f32.mrf.mxu1 }
 0x743   :  { %1675 = vst [vmem:[%s2385_s13 + $0x60] sm:$0xff] %v1559_v15  ;;  %1677 = vst [vmem:[%s2385_s13 + $0x70] sm:$0xff] %v1630_v31  ;;  %v1561_v5 = vadd.f32 %v1560_v59, %v1487_v51  ;;  %v1632_v6 = vadd.f32 %v1631_v55, %v1487_v51 }
 0x745   :  { %1676 = vst [vmem:[%s2385_s13 + $0x68] sm:$0xff] %v1561_v5  ;;  %1678 = vst [vmem:[%s2385_s13 + $0x78] sm:$0xff] %v1632_v6 }

</bundles_post_ra>
